<compile_context>
chip_gen: v6e
topology: v6e:2x2x1
jax: 0.10.0
libtpu: 0.0.40
codegen_flags: <defaults>
</compile_context>

<pallas_src>
import jax
import jax.numpy as jnp
from jax.experimental import pallas as pl
from jax.experimental.pallas import tpu as pltpu

# ----- small, config-consistent hyper-parameters ------------------------------
B = 2              # batch
T = 8              # sequence_step_size (time steps consumed by the ConvLSTM)
F = 16             # num_features (e.g. num_mfcc)
H = 8              # conv_lstm_num_filters    (H * F = 128 -> full MXU contraction)
K = 3              # conv_lstm_filter_size
PAD = (K - 1) // 2
FC1 = 32           # fc1_dim
FC2 = 1            # fc2_dim
FP = F + 2 * PAD   # feature axis padded for the conv


def _sigmoid(v):
    # sigmoid(x) = 0.5 * (1 + tanh(x / 2)): one EUP transcendental, no f32 divide.
    return 0.5 * jnp.tanh(0.5 * v) + 0.5


def _softplus(v):
    # numerically stable softplus (no inf intermediate for large v).
    return jnp.maximum(v, 0.0) + jnp.log(1.0 + jnp.exp(-jnp.abs(v)))


def spira_convlstm_kernel(xg_ref, whf_ref, mlo_ref, mhi_ref,
                          w1f_ref, b1_ref, w2_ref, b2_ref,
                          out_ref, cflat_ref):
    # ----- loop-invariant loads (hoisted out of the time loop) -----
    whf = whf_ref[...]          # (4H, K*H)  recurrent conv weights, taps flattened
    mlo = mlo_ref[...]          # (H, B*F)   zero where f == 0      (left-neighbor tap)
    mhi = mhi_ref[...]          # (H, B*F)   zero where f == F - 1  (right-neighbor tap)

    def step(t, carry):
        h_prev, c_prev = carry                                   # each (H, B*F)
        # Recurrent 1-D conv over the feature axis: build the K=3 shifted taps with
        # lane rolls (XLU) + boundary masks (no bleed across batch/feature edges),
        # then ONE MXU matmul against the flattened hidden-path weights.
        h_m1 = pltpu.roll(h_prev, 1, axis=1) * mlo               # h[., f-1]
        h_p1 = pltpu.roll(h_prev, B * F - 1, axis=1) * mhi       # h[., f+1]
        u = jnp.concatenate([h_m1, h_prev, h_p1], axis=0)        # (K*H, B*F)
        gates = xg_ref[t] + jnp.dot(whf, u,
                                    preferred_element_type=jnp.float32)  # (4H, B*F)
        i_g = _sigmoid(gates[0 * H:1 * H])
        f_g = _sigmoid(gates[1 * H:2 * H])
        o_g = _sigmoid(gates[2 * H:3 * H])
        g_g = jnp.tanh(gates[3 * H:4 * H])
        c_new = f_g * c_prev + i_g * g_g
        h_new = o_g * jnp.tanh(c_new)
        return h_new, c_new

    init = (jnp.zeros((H, B * F), jnp.float32),
            jnp.zeros((H, B * F), jnp.float32))
    _, c_fin = jax.lax.fori_loop(0, T, step, init, unroll=True)

    # ----- head: fc1 -> Mish -> (dropout = identity) -> fc2 -> sigmoid -----
    # Flatten the final cell state to (B, H*F) (torch flatten order h*F + f) once,
    # via 16 tiny static stores into VMEM scratch; then a single 128-wide matmul.
    for b in range(B):
        for h in range(H):
            cflat_ref[b:b + 1, h * F:(h + 1) * F] = c_fin[h:h + 1, b * F:(b + 1) * F]
    z1 = jnp.dot(cflat_ref[...], w1f_ref[...],
                 preferred_element_type=jnp.float32) + b1_ref[...]
    z1 = z1 * jnp.tanh(_softplus(z1))                            # Mish
    z2 = jnp.dot(z1, w2_ref[...],
                 preferred_element_type=jnp.float32) + b2_ref[...]
    out_ref[...] = _sigmoid(z2).astype(out_ref.dtype)


def spira_forward(x, params):
    """x: (B, T, F) float32 -- the module input before .unsqueeze(1)."""
    wx, wh, bg, w1, b1, w2, b2 = params
    x_tm = jnp.transpose(x, (1, 0, 2)).astype(jnp.float32)        # (T, B, F)
    x_pad = jnp.pad(x_tm, ((0, 0), (0, 0), (PAD, PAD)))           # (T, B, FP)

    # Non-recurrent input path + bias, precomputed outside the sequential kernel:
    #   xg[t, g, b, f] = bg[g] + sum_k wx[k, g, 0] * x_pad[t, b, f + k]
    xg = jnp.broadcast_to(bg[:, 0][None, :, None, None], (T, 4 * H, B, F))
    for k in range(K):
        xg = xg + wx[k, :, 0][None, :, None, None] * x_pad[:, None, :, k:k + F]
    xg = xg.reshape(T, 4 * H, B * F).astype(jnp.float32)          # (T, 4H, B*F)

    # Recurrent conv weights flattened over (tap, in-channel): whf[g, k*H+h] = wh[k, g, h].
    whf = jnp.transpose(wh, (1, 0, 2)).reshape(4 * H, K * H)
    # fc1 weights flattened to one 128-wide contraction (torch flatten order h*F + f).
    w1f = w1.reshape(H * F, FC1)

    # Boundary masks for the rolled hidden taps: zero the f==0 / f==F-1 column of each
    # batch's lane block so the conv never bleeds across batch / feature edges.
    f_col = jnp.tile(jnp.arange(F, dtype=jnp.int32), B)                       # (B*F,)
    mlo = jnp.broadcast_to((f_col > 0).astype(jnp.float32)[None, :], (H, B * F))
    mhi = jnp.broadcast_to((f_col < F - 1).astype(jnp.float32)[None, :], (H, B * F))

    # Single invocation, no grid: everything (a few tens of KB) fits VMEM trivially.
    return pl.pallas_call(
        spira_convlstm_kernel,
        out_shape=jax.ShapeDtypeStruct((B, FC2), jnp.float32),
        scratch_shapes=[pltpu.VMEM((B, H * F), jnp.float32)],     # flattened cell state
    )(xg, whf, mlo, mhi, w1f, b1, w2, b2)


def init_params(key):
    ks = jax.random.split(key, 7)
    scale = 0.1
    wx = scale * jax.random.normal(ks[0], (K, 4 * H, 1), jnp.float32)   # input-path conv taps
    wh = scale * jax.random.normal(ks[1], (K, 4 * H, H), jnp.float32)   # hidden-path conv taps
    bg = scale * jax.random.normal(ks[2], (4 * H, 1), jnp.float32)      # gate bias
    # w1 equals torch fc1.weight.T reshaped to (H, F, FC1) (flatten order h*F + f)
    w1 = scale * jax.random.normal(ks[3], (H, F, FC1), jnp.float32)
    b1 = scale * jax.random.normal(ks[4], (1, FC1), jnp.float32)
    w2 = scale * jax.random.normal(ks[5], (FC1, FC2), jnp.float32)
    b2 = scale * jax.random.normal(ks[6], (1, FC2), jnp.float32)
    return wx, wh, bg, w1, b1, w2, b2


if __name__ == "__main__":
    key = jax.random.PRNGKey(0)
    kx, kp = jax.random.split(key)
    x = jax.random.normal(kx, (B, T, F), jnp.float32)   # (batch, time, features)
    params = init_params(kp)

    out = spira_forward(x, params)
    out = jax.block_until_ready(out)
    assert out.shape == (B, FC2)
    assert bool(jnp.all(jnp.isfinite(out)))
    print("KERNEL_OK")
</pallas_src>

<mosaic_0001>
module attributes {stable_mosaic.version = 11 : i64} {
  func.func @spira_convlstm_kernel(%arg0: memref<8x32x32xf32, #tpu.memory_space<vmem>>, %arg1: memref<32x24xf32, #tpu.memory_space<vmem>>, %arg2: memref<8x32xf32, #tpu.memory_space<vmem>>, %arg3: memref<8x32xf32, #tpu.memory_space<vmem>>, %arg4: memref<128x32xf32, #tpu.memory_space<vmem>>, %arg5: memref<1x32xf32, #tpu.memory_space<vmem>>, %arg6: memref<32x1xf32, #tpu.memory_space<vmem>>, %arg7: memref<1x1xf32, #tpu.memory_space<vmem>>, %arg8: memref<2x1xf32, #tpu.memory_space<vmem>>, %arg9: memref<2x128xf32, #tpu.memory_space<vmem>>) attributes {dimension_semantics = [], scalar_prefetch = 0 : i64, scratch_operands = 1 : i64, tpu.core_type = #tpu.core_type<tc>} {
    %c0 = arith.constant 0 : index
    %c0_0 = arith.constant 0 : index
    %0 = vector.load %arg1[%c0, %c0_0] : memref<32x24xf32, #tpu.memory_space<vmem>>, vector<32x24xf32>
    %c0_1 = arith.constant 0 : index
    %c0_2 = arith.constant 0 : index
    %1 = vector.load %arg2[%c0_1, %c0_2] : memref<8x32xf32, #tpu.memory_space<vmem>>, vector<8x32xf32>
    %c0_3 = arith.constant 0 : index
    %c0_4 = arith.constant 0 : index
    %2 = vector.load %arg3[%c0_3, %c0_4] : memref<8x32xf32, #tpu.memory_space<vmem>>, vector<8x32xf32>
    %cst = arith.constant 0.000000e+00 : f32
    %3 = vector.broadcast %cst : f32 to vector<8x32xf32>
    %cst_5 = arith.constant 0.000000e+00 : f32
    %4 = vector.broadcast %cst_5 : f32 to vector<8x32xf32>
    %c0_i32 = arith.constant 0 : i32
    %c1_i32 = arith.constant 1 : i32
    %5 = tpu.dynamic_rotate %3 by %c1_i32 dim 1 : vector<8x32xf32>, i32 -> vector<8x32xf32>
    %6 = arith.mulf %5, %1 : vector<8x32xf32>
    %c31_i32 = arith.constant 31 : i32
    %7 = tpu.dynamic_rotate %3 by %c31_i32 dim 1 : vector<8x32xf32>, i32 -> vector<8x32xf32>
    %8 = arith.mulf %7, %2 : vector<8x32xf32>
    %9 = tpu.concatenate %6, %3, %8 in 0 : vector<8x32xf32>, vector<8x32xf32>, vector<8x32xf32> -> vector<24x32xf32>
    %10 = arith.index_cast %c0_i32 : i32 to index
    %c0_6 = arith.constant 0 : index
    %c0_7 = arith.constant 0 : index
    %11 = vector.load %arg0[%10, %c0_6, %c0_7] : memref<8x32x32xf32, #tpu.memory_space<vmem>>, vector<1x32x32xf32>
    %12 = vector.shape_cast %11 : vector<1x32x32xf32> to vector<32x32xf32>
    %cst_8 = arith.constant dense<0.000000e+00> : vector<32x32xf32>
    %13 = tpu.matmul %0, %9, %cst_8 {dimension_numbers = #tpu.dot_dimension_numbers<[1], [0], [0], [1], [0, 0, 1, 1], [], []>} : vector<32x24xf32>, vector<24x32xf32>, vector<32x32xf32> -> vector<32x32xf32>
    %14 = arith.addf %12, %13 : vector<32x32xf32>
    %15 = vector.extract_strided_slice %14 {offsets = [0, 0], sizes = [8, 32], strides = [1, 1]} : vector<32x32xf32> to vector<8x32xf32>
    %cst_9 = arith.constant 5.000000e-01 : f32
    %16 = vector.broadcast %cst_9 : f32 to vector<8x32xf32>
    %17 = arith.mulf %16, %15 : vector<8x32xf32>
    %18 = math.tanh %17 : vector<8x32xf32>
    %cst_10 = arith.constant 5.000000e-01 : f32
    %19 = vector.broadcast %cst_10 : f32 to vector<8x32xf32>
    %20 = arith.mulf %19, %18 : vector<8x32xf32>
    %cst_11 = arith.constant 5.000000e-01 : f32
    %21 = vector.broadcast %cst_11 : f32 to vector<8x32xf32>
    %22 = arith.addf %20, %21 : vector<8x32xf32>
    %23 = vector.extract_strided_slice %14 {offsets = [8, 0], sizes = [8, 32], strides = [1, 1]} : vector<32x32xf32> to vector<8x32xf32>
    %cst_12 = arith.constant 5.000000e-01 : f32
    %24 = vector.broadcast %cst_12 : f32 to vector<8x32xf32>
    %25 = arith.mulf %24, %23 : vector<8x32xf32>
    %26 = math.tanh %25 : vector<8x32xf32>
    %cst_13 = arith.constant 5.000000e-01 : f32
    %27 = vector.broadcast %cst_13 : f32 to vector<8x32xf32>
    %28 = arith.mulf %27, %26 : vector<8x32xf32>
    %cst_14 = arith.constant 5.000000e-01 : f32
    %29 = vector.broadcast %cst_14 : f32 to vector<8x32xf32>
    %30 = arith.addf %28, %29 : vector<8x32xf32>
    %31 = vector.extract_strided_slice %14 {offsets = [16, 0], sizes = [8, 32], strides = [1, 1]} : vector<32x32xf32> to vector<8x32xf32>
    %cst_15 = arith.constant 5.000000e-01 : f32
    %32 = vector.broadcast %cst_15 : f32 to vector<8x32xf32>
    %33 = arith.mulf %32, %31 : vector<8x32xf32>
    %34 = math.tanh %33 : vector<8x32xf32>
    %cst_16 = arith.constant 5.000000e-01 : f32
    %35 = vector.broadcast %cst_16 : f32 to vector<8x32xf32>
    %36 = arith.mulf %35, %34 : vector<8x32xf32>
    %cst_17 = arith.constant 5.000000e-01 : f32
    %37 = vector.broadcast %cst_17 : f32 to vector<8x32xf32>
    %38 = arith.addf %36, %37 : vector<8x32xf32>
    %39 = vector.extract_strided_slice %14 {offsets = [24, 0], sizes = [8, 32], strides = [1, 1]} : vector<32x32xf32> to vector<8x32xf32>
    %40 = math.tanh %39 : vector<8x32xf32>
    %41 = arith.mulf %30, %4 : vector<8x32xf32>
    %42 = arith.mulf %22, %40 : vector<8x32xf32>
    %43 = arith.addf %41, %42 : vector<8x32xf32>
    %44 = math.tanh %43 : vector<8x32xf32>
    %45 = arith.mulf %38, %44 : vector<8x32xf32>
    %c1_i32_18 = arith.constant 1 : i32
    %c1_i32_19 = arith.constant 1 : i32
    %46 = tpu.dynamic_rotate %45 by %c1_i32_19 dim 1 : vector<8x32xf32>, i32 -> vector<8x32xf32>
    %47 = arith.mulf %46, %1 : vector<8x32xf32>
    %c31_i32_20 = arith.constant 31 : i32
    %48 = tpu.dynamic_rotate %45 by %c31_i32_20 dim 1 : vector<8x32xf32>, i32 -> vector<8x32xf32>
    %49 = arith.mulf %48, %2 : vector<8x32xf32>
    %50 = tpu.concatenate %47, %45, %49 in 0 : vector<8x32xf32>, vector<8x32xf32>, vector<8x32xf32> -> vector<24x32xf32>
    %51 = arith.index_cast %c1_i32_18 : i32 to index
    %c0_21 = arith.constant 0 : index
    %c0_22 = arith.constant 0 : index
    %52 = vector.load %arg0[%51, %c0_21, %c0_22] : memref<8x32x32xf32, #tpu.memory_space<vmem>>, vector<1x32x32xf32>
    %53 = vector.shape_cast %52 : vector<1x32x32xf32> to vector<32x32xf32>
    %cst_23 = arith.constant dense<0.000000e+00> : vector<32x32xf32>
    %54 = tpu.matmul %0, %50, %cst_23 {dimension_numbers = #tpu.dot_dimension_numbers<[1], [0], [0], [1], [0, 0, 1, 1], [], []>} : vector<32x24xf32>, vector<24x32xf32>, vector<32x32xf32> -> vector<32x32xf32>
    %55 = arith.addf %53, %54 : vector<32x32xf32>
    %56 = vector.extract_strided_slice %55 {offsets = [0, 0], sizes = [8, 32], strides = [1, 1]} : vector<32x32xf32> to vector<8x32xf32>
    %cst_24 = arith.constant 5.000000e-01 : f32
    %57 = vector.broadcast %cst_24 : f32 to vector<8x32xf32>
    %58 = arith.mulf %57, %56 : vector<8x32xf32>
    %59 = math.tanh %58 : vector<8x32xf32>
    %cst_25 = arith.constant 5.000000e-01 : f32
    %60 = vector.broadcast %cst_25 : f32 to vector<8x32xf32>
    %61 = arith.mulf %60, %59 : vector<8x32xf32>
    %cst_26 = arith.constant 5.000000e-01 : f32
    %62 = vector.broadcast %cst_26 : f32 to vector<8x32xf32>
    %63 = arith.addf %61, %62 : vector<8x32xf32>
    %64 = vector.extract_strided_slice %55 {offsets = [8, 0], sizes = [8, 32], strides = [1, 1]} : vector<32x32xf32> to vector<8x32xf32>
    %cst_27 = arith.constant 5.000000e-01 : f32
    %65 = vector.broadcast %cst_27 : f32 to vector<8x32xf32>
    %66 = arith.mulf %65, %64 : vector<8x32xf32>
    %67 = math.tanh %66 : vector<8x32xf32>
    %cst_28 = arith.constant 5.000000e-01 : f32
    %68 = vector.broadcast %cst_28 : f32 to vector<8x32xf32>
    %69 = arith.mulf %68, %67 : vector<8x32xf32>
    %cst_29 = arith.constant 5.000000e-01 : f32
    %70 = vector.broadcast %cst_29 : f32 to vector<8x32xf32>
    %71 = arith.addf %69, %70 : vector<8x32xf32>
    %72 = vector.extract_strided_slice %55 {offsets = [16, 0], sizes = [8, 32], strides = [1, 1]} : vector<32x32xf32> to vector<8x32xf32>
    %cst_30 = arith.constant 5.000000e-01 : f32
    %73 = vector.broadcast %cst_30 : f32 to vector<8x32xf32>
    %74 = arith.mulf %73, %72 : vector<8x32xf32>
    %75 = math.tanh %74 : vector<8x32xf32>
    %cst_31 = arith.constant 5.000000e-01 : f32
    %76 = vector.broadcast %cst_31 : f32 to vector<8x32xf32>
    %77 = arith.mulf %76, %75 : vector<8x32xf32>
    %cst_32 = arith.constant 5.000000e-01 : f32
    %78 = vector.broadcast %cst_32 : f32 to vector<8x32xf32>
    %79 = arith.addf %77, %78 : vector<8x32xf32>
    %80 = vector.extract_strided_slice %55 {offsets = [24, 0], sizes = [8, 32], strides = [1, 1]} : vector<32x32xf32> to vector<8x32xf32>
    %81 = math.tanh %80 : vector<8x32xf32>
    %82 = arith.mulf %71, %43 : vector<8x32xf32>
    %83 = arith.mulf %63, %81 : vector<8x32xf32>
    %84 = arith.addf %82, %83 : vector<8x32xf32>
    %85 = math.tanh %84 : vector<8x32xf32>
    %86 = arith.mulf %79, %85 : vector<8x32xf32>
    %c2_i32 = arith.constant 2 : i32
    %c1_i32_33 = arith.constant 1 : i32
    %87 = tpu.dynamic_rotate %86 by %c1_i32_33 dim 1 : vector<8x32xf32>, i32 -> vector<8x32xf32>
    %88 = arith.mulf %87, %1 : vector<8x32xf32>
    %c31_i32_34 = arith.constant 31 : i32
    %89 = tpu.dynamic_rotate %86 by %c31_i32_34 dim 1 : vector<8x32xf32>, i32 -> vector<8x32xf32>
    %90 = arith.mulf %89, %2 : vector<8x32xf32>
    %91 = tpu.concatenate %88, %86, %90 in 0 : vector<8x32xf32>, vector<8x32xf32>, vector<8x32xf32> -> vector<24x32xf32>
    %92 = arith.index_cast %c2_i32 : i32 to index
    %c0_35 = arith.constant 0 : index
    %c0_36 = arith.constant 0 : index
    %93 = vector.load %arg0[%92, %c0_35, %c0_36] : memref<8x32x32xf32, #tpu.memory_space<vmem>>, vector<1x32x32xf32>
    %94 = vector.shape_cast %93 : vector<1x32x32xf32> to vector<32x32xf32>
    %cst_37 = arith.constant dense<0.000000e+00> : vector<32x32xf32>
    %95 = tpu.matmul %0, %91, %cst_37 {dimension_numbers = #tpu.dot_dimension_numbers<[1], [0], [0], [1], [0, 0, 1, 1], [], []>} : vector<32x24xf32>, vector<24x32xf32>, vector<32x32xf32> -> vector<32x32xf32>
    %96 = arith.addf %94, %95 : vector<32x32xf32>
    %97 = vector.extract_strided_slice %96 {offsets = [0, 0], sizes = [8, 32], strides = [1, 1]} : vector<32x32xf32> to vector<8x32xf32>
    %cst_38 = arith.constant 5.000000e-01 : f32
    %98 = vector.broadcast %cst_38 : f32 to vector<8x32xf32>
    %99 = arith.mulf %98, %97 : vector<8x32xf32>
    %100 = math.tanh %99 : vector<8x32xf32>
    %cst_39 = arith.constant 5.000000e-01 : f32
    %101 = vector.broadcast %cst_39 : f32 to vector<8x32xf32>
    %102 = arith.mulf %101, %100 : vector<8x32xf32>
    %cst_40 = arith.constant 5.000000e-01 : f32
    %103 = vector.broadcast %cst_40 : f32 to vector<8x32xf32>
    %104 = arith.addf %102, %103 : vector<8x32xf32>
    %105 = vector.extract_strided_slice %96 {offsets = [8, 0], sizes = [8, 32], strides = [1, 1]} : vector<32x32xf32> to vector<8x32xf32>
    %cst_41 = arith.constant 5.000000e-01 : f32
    %106 = vector.broadcast %cst_41 : f32 to vector<8x32xf32>
    %107 = arith.mulf %106, %105 : vector<8x32xf32>
    %108 = math.tanh %107 : vector<8x32xf32>
    %cst_42 = arith.constant 5.000000e-01 : f32
    %109 = vector.broadcast %cst_42 : f32 to vector<8x32xf32>
    %110 = arith.mulf %109, %108 : vector<8x32xf32>
    %cst_43 = arith.constant 5.000000e-01 : f32
    %111 = vector.broadcast %cst_43 : f32 to vector<8x32xf32>
    %112 = arith.addf %110, %111 : vector<8x32xf32>
    %113 = vector.extract_strided_slice %96 {offsets = [16, 0], sizes = [8, 32], strides = [1, 1]} : vector<32x32xf32> to vector<8x32xf32>
    %cst_44 = arith.constant 5.000000e-01 : f32
    %114 = vector.broadcast %cst_44 : f32 to vector<8x32xf32>
    %115 = arith.mulf %114, %113 : vector<8x32xf32>
    %116 = math.tanh %115 : vector<8x32xf32>
    %cst_45 = arith.constant 5.000000e-01 : f32
    %117 = vector.broadcast %cst_45 : f32 to vector<8x32xf32>
    %118 = arith.mulf %117, %116 : vector<8x32xf32>
    %cst_46 = arith.constant 5.000000e-01 : f32
    %119 = vector.broadcast %cst_46 : f32 to vector<8x32xf32>
    %120 = arith.addf %118, %119 : vector<8x32xf32>
    %121 = vector.extract_strided_slice %96 {offsets = [24, 0], sizes = [8, 32], strides = [1, 1]} : vector<32x32xf32> to vector<8x32xf32>
    %122 = math.tanh %121 : vector<8x32xf32>
    %123 = arith.mulf %112, %84 : vector<8x32xf32>
    %124 = arith.mulf %104, %122 : vector<8x32xf32>
    %125 = arith.addf %123, %124 : vector<8x32xf32>
    %126 = math.tanh %125 : vector<8x32xf32>
    %127 = arith.mulf %120, %126 : vector<8x32xf32>
    %c3_i32 = arith.constant 3 : i32
    %c1_i32_47 = arith.constant 1 : i32
    %128 = tpu.dynamic_rotate %127 by %c1_i32_47 dim 1 : vector<8x32xf32>, i32 -> vector<8x32xf32>
    %129 = arith.mulf %128, %1 : vector<8x32xf32>
    %c31_i32_48 = arith.constant 31 : i32
    %130 = tpu.dynamic_rotate %127 by %c31_i32_48 dim 1 : vector<8x32xf32>, i32 -> vector<8x32xf32>
    %131 = arith.mulf %130, %2 : vector<8x32xf32>
    %132 = tpu.concatenate %129, %127, %131 in 0 : vector<8x32xf32>, vector<8x32xf32>, vector<8x32xf32> -> vector<24x32xf32>
    %133 = arith.index_cast %c3_i32 : i32 to index
    %c0_49 = arith.constant 0 : index
    %c0_50 = arith.constant 0 : index
    %134 = vector.load %arg0[%133, %c0_49, %c0_50] : memref<8x32x32xf32, #tpu.memory_space<vmem>>, vector<1x32x32xf32>
    %135 = vector.shape_cast %134 : vector<1x32x32xf32> to vector<32x32xf32>
    %cst_51 = arith.constant dense<0.000000e+00> : vector<32x32xf32>
    %136 = tpu.matmul %0, %132, %cst_51 {dimension_numbers = #tpu.dot_dimension_numbers<[1], [0], [0], [1], [0, 0, 1, 1], [], []>} : vector<32x24xf32>, vector<24x32xf32>, vector<32x32xf32> -> vector<32x32xf32>
    %137 = arith.addf %135, %136 : vector<32x32xf32>
    %138 = vector.extract_strided_slice %137 {offsets = [0, 0], sizes = [8, 32], strides = [1, 1]} : vector<32x32xf32> to vector<8x32xf32>
    %cst_52 = arith.constant 5.000000e-01 : f32
    %139 = vector.broadcast %cst_52 : f32 to vector<8x32xf32>
    %140 = arith.mulf %139, %138 : vector<8x32xf32>
    %141 = math.tanh %140 : vector<8x32xf32>
    %cst_53 = arith.constant 5.000000e-01 : f32
    %142 = vector.broadcast %cst_53 : f32 to vector<8x32xf32>
    %143 = arith.mulf %142, %141 : vector<8x32xf32>
    %cst_54 = arith.constant 5.000000e-01 : f32
    %144 = vector.broadcast %cst_54 : f32 to vector<8x32xf32>
    %145 = arith.addf %143, %144 : vector<8x32xf32>
    %146 = vector.extract_strided_slice %137 {offsets = [8, 0], sizes = [8, 32], strides = [1, 1]} : vector<32x32xf32> to vector<8x32xf32>
    %cst_55 = arith.constant 5.000000e-01 : f32
    %147 = vector.broadcast %cst_55 : f32 to vector<8x32xf32>
    %148 = arith.mulf %147, %146 : vector<8x32xf32>
    %149 = math.tanh %148 : vector<8x32xf32>
    %cst_56 = arith.constant 5.000000e-01 : f32
    %150 = vector.broadcast %cst_56 : f32 to vector<8x32xf32>
    %151 = arith.mulf %150, %149 : vector<8x32xf32>
    %cst_57 = arith.constant 5.000000e-01 : f32
    %152 = vector.broadcast %cst_57 : f32 to vector<8x32xf32>
    %153 = arith.addf %151, %152 : vector<8x32xf32>
    %154 = vector.extract_strided_slice %137 {offsets = [16, 0], sizes = [8, 32], strides = [1, 1]} : vector<32x32xf32> to vector<8x32xf32>
    %cst_58 = arith.constant 5.000000e-01 : f32
    %155 = vector.broadcast %cst_58 : f32 to vector<8x32xf32>
    %156 = arith.mulf %155, %154 : vector<8x32xf32>
    %157 = math.tanh %156 : vector<8x32xf32>
    %cst_59 = arith.constant 5.000000e-01 : f32
    %158 = vector.broadcast %cst_59 : f32 to vector<8x32xf32>
    %159 = arith.mulf %158, %157 : vector<8x32xf32>
    %cst_60 = arith.constant 5.000000e-01 : f32
    %160 = vector.broadcast %cst_60 : f32 to vector<8x32xf32>
    %161 = arith.addf %159, %160 : vector<8x32xf32>
    %162 = vector.extract_strided_slice %137 {offsets = [24, 0], sizes = [8, 32], strides = [1, 1]} : vector<32x32xf32> to vector<8x32xf32>
    %163 = math.tanh %162 : vector<8x32xf32>
    %164 = arith.mulf %153, %125 : vector<8x32xf32>
    %165 = arith.mulf %145, %163 : vector<8x32xf32>
    %166 = arith.addf %164, %165 : vector<8x32xf32>
    %167 = math.tanh %166 : vector<8x32xf32>
    %168 = arith.mulf %161, %167 : vector<8x32xf32>
    %c4_i32 = arith.constant 4 : i32
    %c1_i32_61 = arith.constant 1 : i32
    %169 = tpu.dynamic_rotate %168 by %c1_i32_61 dim 1 : vector<8x32xf32>, i32 -> vector<8x32xf32>
    %170 = arith.mulf %169, %1 : vector<8x32xf32>
    %c31_i32_62 = arith.constant 31 : i32
    %171 = tpu.dynamic_rotate %168 by %c31_i32_62 dim 1 : vector<8x32xf32>, i32 -> vector<8x32xf32>
    %172 = arith.mulf %171, %2 : vector<8x32xf32>
    %173 = tpu.concatenate %170, %168, %172 in 0 : vector<8x32xf32>, vector<8x32xf32>, vector<8x32xf32> -> vector<24x32xf32>
    %174 = arith.index_cast %c4_i32 : i32 to index
    %c0_63 = arith.constant 0 : index
    %c0_64 = arith.constant 0 : index
    %175 = vector.load %arg0[%174, %c0_63, %c0_64] : memref<8x32x32xf32, #tpu.memory_space<vmem>>, vector<1x32x32xf32>
    %176 = vector.shape_cast %175 : vector<1x32x32xf32> to vector<32x32xf32>
    %cst_65 = arith.constant dense<0.000000e+00> : vector<32x32xf32>
    %177 = tpu.matmul %0, %173, %cst_65 {dimension_numbers = #tpu.dot_dimension_numbers<[1], [0], [0], [1], [0, 0, 1, 1], [], []>} : vector<32x24xf32>, vector<24x32xf32>, vector<32x32xf32> -> vector<32x32xf32>
    %178 = arith.addf %176, %177 : vector<32x32xf32>
    %179 = vector.extract_strided_slice %178 {offsets = [0, 0], sizes = [8, 32], strides = [1, 1]} : vector<32x32xf32> to vector<8x32xf32>
    %cst_66 = arith.constant 5.000000e-01 : f32
    %180 = vector.broadcast %cst_66 : f32 to vector<8x32xf32>
    %181 = arith.mulf %180, %179 : vector<8x32xf32>
    %182 = math.tanh %181 : vector<8x32xf32>
    %cst_67 = arith.constant 5.000000e-01 : f32
    %183 = vector.broadcast %cst_67 : f32 to vector<8x32xf32>
    %184 = arith.mulf %183, %182 : vector<8x32xf32>
    %cst_68 = arith.constant 5.000000e-01 : f32
    %185 = vector.broadcast %cst_68 : f32 to vector<8x32xf32>
    %186 = arith.addf %184, %185 : vector<8x32xf32>
    %187 = vector.extract_strided_slice %178 {offsets = [8, 0], sizes = [8, 32], strides = [1, 1]} : vector<32x32xf32> to vector<8x32xf32>
    %cst_69 = arith.constant 5.000000e-01 : f32
    %188 = vector.broadcast %cst_69 : f32 to vector<8x32xf32>
    %189 = arith.mulf %188, %187 : vector<8x32xf32>
    %190 = math.tanh %189 : vector<8x32xf32>
    %cst_70 = arith.constant 5.000000e-01 : f32
    %191 = vector.broadcast %cst_70 : f32 to vector<8x32xf32>
    %192 = arith.mulf %191, %190 : vector<8x32xf32>
    %cst_71 = arith.constant 5.000000e-01 : f32
    %193 = vector.broadcast %cst_71 : f32 to vector<8x32xf32>
    %194 = arith.addf %192, %193 : vector<8x32xf32>
    %195 = vector.extract_strided_slice %178 {offsets = [16, 0], sizes = [8, 32], strides = [1, 1]} : vector<32x32xf32> to vector<8x32xf32>
    %cst_72 = arith.constant 5.000000e-01 : f32
    %196 = vector.broadcast %cst_72 : f32 to vector<8x32xf32>
    %197 = arith.mulf %196, %195 : vector<8x32xf32>
    %198 = math.tanh %197 : vector<8x32xf32>
    %cst_73 = arith.constant 5.000000e-01 : f32
    %199 = vector.broadcast %cst_73 : f32 to vector<8x32xf32>
    %200 = arith.mulf %199, %198 : vector<8x32xf32>
    %cst_74 = arith.constant 5.000000e-01 : f32
    %201 = vector.broadcast %cst_74 : f32 to vector<8x32xf32>
    %202 = arith.addf %200, %201 : vector<8x32xf32>
    %203 = vector.extract_strided_slice %178 {offsets = [24, 0], sizes = [8, 32], strides = [1, 1]} : vector<32x32xf32> to vector<8x32xf32>
    %204 = math.tanh %203 : vector<8x32xf32>
    %205 = arith.mulf %194, %166 : vector<8x32xf32>
    %206 = arith.mulf %186, %204 : vector<8x32xf32>
    %207 = arith.addf %205, %206 : vector<8x32xf32>
    %208 = math.tanh %207 : vector<8x32xf32>
    %209 = arith.mulf %202, %208 : vector<8x32xf32>
    %c5_i32 = arith.constant 5 : i32
    %c1_i32_75 = arith.constant 1 : i32
    %210 = tpu.dynamic_rotate %209 by %c1_i32_75 dim 1 : vector<8x32xf32>, i32 -> vector<8x32xf32>
    %211 = arith.mulf %210, %1 : vector<8x32xf32>
    %c31_i32_76 = arith.constant 31 : i32
    %212 = tpu.dynamic_rotate %209 by %c31_i32_76 dim 1 : vector<8x32xf32>, i32 -> vector<8x32xf32>
    %213 = arith.mulf %212, %2 : vector<8x32xf32>
    %214 = tpu.concatenate %211, %209, %213 in 0 : vector<8x32xf32>, vector<8x32xf32>, vector<8x32xf32> -> vector<24x32xf32>
    %215 = arith.index_cast %c5_i32 : i32 to index
    %c0_77 = arith.constant 0 : index
    %c0_78 = arith.constant 0 : index
    %216 = vector.load %arg0[%215, %c0_77, %c0_78] : memref<8x32x32xf32, #tpu.memory_space<vmem>>, vector<1x32x32xf32>
    %217 = vector.shape_cast %216 : vector<1x32x32xf32> to vector<32x32xf32>
    %cst_79 = arith.constant dense<0.000000e+00> : vector<32x32xf32>
    %218 = tpu.matmul %0, %214, %cst_79 {dimension_numbers = #tpu.dot_dimension_numbers<[1], [0], [0], [1], [0, 0, 1, 1], [], []>} : vector<32x24xf32>, vector<24x32xf32>, vector<32x32xf32> -> vector<32x32xf32>
    %219 = arith.addf %217, %218 : vector<32x32xf32>
    %220 = vector.extract_strided_slice %219 {offsets = [0, 0], sizes = [8, 32], strides = [1, 1]} : vector<32x32xf32> to vector<8x32xf32>
    %cst_80 = arith.constant 5.000000e-01 : f32
    %221 = vector.broadcast %cst_80 : f32 to vector<8x32xf32>
    %222 = arith.mulf %221, %220 : vector<8x32xf32>
    %223 = math.tanh %222 : vector<8x32xf32>
    %cst_81 = arith.constant 5.000000e-01 : f32
    %224 = vector.broadcast %cst_81 : f32 to vector<8x32xf32>
    %225 = arith.mulf %224, %223 : vector<8x32xf32>
    %cst_82 = arith.constant 5.000000e-01 : f32
    %226 = vector.broadcast %cst_82 : f32 to vector<8x32xf32>
    %227 = arith.addf %225, %226 : vector<8x32xf32>
    %228 = vector.extract_strided_slice %219 {offsets = [8, 0], sizes = [8, 32], strides = [1, 1]} : vector<32x32xf32> to vector<8x32xf32>
    %cst_83 = arith.constant 5.000000e-01 : f32
    %229 = vector.broadcast %cst_83 : f32 to vector<8x32xf32>
    %230 = arith.mulf %229, %228 : vector<8x32xf32>
    %231 = math.tanh %230 : vector<8x32xf32>
    %cst_84 = arith.constant 5.000000e-01 : f32
    %232 = vector.broadcast %cst_84 : f32 to vector<8x32xf32>
    %233 = arith.mulf %232, %231 : vector<8x32xf32>
    %cst_85 = arith.constant 5.000000e-01 : f32
    %234 = vector.broadcast %cst_85 : f32 to vector<8x32xf32>
    %235 = arith.addf %233, %234 : vector<8x32xf32>
    %236 = vector.extract_strided_slice %219 {offsets = [16, 0], sizes = [8, 32], strides = [1, 1]} : vector<32x32xf32> to vector<8x32xf32>
    %cst_86 = arith.constant 5.000000e-01 : f32
    %237 = vector.broadcast %cst_86 : f32 to vector<8x32xf32>
    %238 = arith.mulf %237, %236 : vector<8x32xf32>
    %239 = math.tanh %238 : vector<8x32xf32>
    %cst_87 = arith.constant 5.000000e-01 : f32
    %240 = vector.broadcast %cst_87 : f32 to vector<8x32xf32>
    %241 = arith.mulf %240, %239 : vector<8x32xf32>
    %cst_88 = arith.constant 5.000000e-01 : f32
    %242 = vector.broadcast %cst_88 : f32 to vector<8x32xf32>
    %243 = arith.addf %241, %242 : vector<8x32xf32>
    %244 = vector.extract_strided_slice %219 {offsets = [24, 0], sizes = [8, 32], strides = [1, 1]} : vector<32x32xf32> to vector<8x32xf32>
    %245 = math.tanh %244 : vector<8x32xf32>
    %246 = arith.mulf %235, %207 : vector<8x32xf32>
    %247 = arith.mulf %227, %245 : vector<8x32xf32>
    %248 = arith.addf %246, %247 : vector<8x32xf32>
    %249 = math.tanh %248 : vector<8x32xf32>
    %250 = arith.mulf %243, %249 : vector<8x32xf32>
    %c6_i32 = arith.constant 6 : i32
    %c1_i32_89 = arith.constant 1 : i32
    %251 = tpu.dynamic_rotate %250 by %c1_i32_89 dim 1 : vector<8x32xf32>, i32 -> vector<8x32xf32>
    %252 = arith.mulf %251, %1 : vector<8x32xf32>
    %c31_i32_90 = arith.constant 31 : i32
    %253 = tpu.dynamic_rotate %250 by %c31_i32_90 dim 1 : vector<8x32xf32>, i32 -> vector<8x32xf32>
    %254 = arith.mulf %253, %2 : vector<8x32xf32>
    %255 = tpu.concatenate %252, %250, %254 in 0 : vector<8x32xf32>, vector<8x32xf32>, vector<8x32xf32> -> vector<24x32xf32>
    %256 = arith.index_cast %c6_i32 : i32 to index
    %c0_91 = arith.constant 0 : index
    %c0_92 = arith.constant 0 : index
    %257 = vector.load %arg0[%256, %c0_91, %c0_92] : memref<8x32x32xf32, #tpu.memory_space<vmem>>, vector<1x32x32xf32>
    %258 = vector.shape_cast %257 : vector<1x32x32xf32> to vector<32x32xf32>
    %cst_93 = arith.constant dense<0.000000e+00> : vector<32x32xf32>
    %259 = tpu.matmul %0, %255, %cst_93 {dimension_numbers = #tpu.dot_dimension_numbers<[1], [0], [0], [1], [0, 0, 1, 1], [], []>} : vector<32x24xf32>, vector<24x32xf32>, vector<32x32xf32> -> vector<32x32xf32>
    %260 = arith.addf %258, %259 : vector<32x32xf32>
    %261 = vector.extract_strided_slice %260 {offsets = [0, 0], sizes = [8, 32], strides = [1, 1]} : vector<32x32xf32> to vector<8x32xf32>
    %cst_94 = arith.constant 5.000000e-01 : f32
    %262 = vector.broadcast %cst_94 : f32 to vector<8x32xf32>
    %263 = arith.mulf %262, %261 : vector<8x32xf32>
    %264 = math.tanh %263 : vector<8x32xf32>
    %cst_95 = arith.constant 5.000000e-01 : f32
    %265 = vector.broadcast %cst_95 : f32 to vector<8x32xf32>
    %266 = arith.mulf %265, %264 : vector<8x32xf32>
    %cst_96 = arith.constant 5.000000e-01 : f32
    %267 = vector.broadcast %cst_96 : f32 to vector<8x32xf32>
    %268 = arith.addf %266, %267 : vector<8x32xf32>
    %269 = vector.extract_strided_slice %260 {offsets = [8, 0], sizes = [8, 32], strides = [1, 1]} : vector<32x32xf32> to vector<8x32xf32>
    %cst_97 = arith.constant 5.000000e-01 : f32
    %270 = vector.broadcast %cst_97 : f32 to vector<8x32xf32>
    %271 = arith.mulf %270, %269 : vector<8x32xf32>
    %272 = math.tanh %271 : vector<8x32xf32>
    %cst_98 = arith.constant 5.000000e-01 : f32
    %273 = vector.broadcast %cst_98 : f32 to vector<8x32xf32>
    %274 = arith.mulf %273, %272 : vector<8x32xf32>
    %cst_99 = arith.constant 5.000000e-01 : f32
    %275 = vector.broadcast %cst_99 : f32 to vector<8x32xf32>
    %276 = arith.addf %274, %275 : vector<8x32xf32>
    %277 = vector.extract_strided_slice %260 {offsets = [16, 0], sizes = [8, 32], strides = [1, 1]} : vector<32x32xf32> to vector<8x32xf32>
    %cst_100 = arith.constant 5.000000e-01 : f32
    %278 = vector.broadcast %cst_100 : f32 to vector<8x32xf32>
    %279 = arith.mulf %278, %277 : vector<8x32xf32>
    %280 = math.tanh %279 : vector<8x32xf32>
    %cst_101 = arith.constant 5.000000e-01 : f32
    %281 = vector.broadcast %cst_101 : f32 to vector<8x32xf32>
    %282 = arith.mulf %281, %280 : vector<8x32xf32>
    %cst_102 = arith.constant 5.000000e-01 : f32
    %283 = vector.broadcast %cst_102 : f32 to vector<8x32xf32>
    %284 = arith.addf %282, %283 : vector<8x32xf32>
    %285 = vector.extract_strided_slice %260 {offsets = [24, 0], sizes = [8, 32], strides = [1, 1]} : vector<32x32xf32> to vector<8x32xf32>
    %286 = math.tanh %285 : vector<8x32xf32>
    %287 = arith.mulf %276, %248 : vector<8x32xf32>
    %288 = arith.mulf %268, %286 : vector<8x32xf32>
    %289 = arith.addf %287, %288 : vector<8x32xf32>
    %290 = math.tanh %289 : vector<8x32xf32>
    %291 = arith.mulf %284, %290 : vector<8x32xf32>
    %c7_i32 = arith.constant 7 : i32
    %c1_i32_103 = arith.constant 1 : i32
    %292 = tpu.dynamic_rotate %291 by %c1_i32_103 dim 1 : vector<8x32xf32>, i32 -> vector<8x32xf32>
    %293 = arith.mulf %292, %1 : vector<8x32xf32>
    %c31_i32_104 = arith.constant 31 : i32
    %294 = tpu.dynamic_rotate %291 by %c31_i32_104 dim 1 : vector<8x32xf32>, i32 -> vector<8x32xf32>
    %295 = arith.mulf %294, %2 : vector<8x32xf32>
    %296 = tpu.concatenate %293, %291, %295 in 0 : vector<8x32xf32>, vector<8x32xf32>, vector<8x32xf32> -> vector<24x32xf32>
    %297 = arith.index_cast %c7_i32 : i32 to index
    %c0_105 = arith.constant 0 : index
    %c0_106 = arith.constant 0 : index
    %298 = vector.load %arg0[%297, %c0_105, %c0_106] : memref<8x32x32xf32, #tpu.memory_space<vmem>>, vector<1x32x32xf32>
    %299 = vector.shape_cast %298 : vector<1x32x32xf32> to vector<32x32xf32>
    %cst_107 = arith.constant dense<0.000000e+00> : vector<32x32xf32>
    %300 = tpu.matmul %0, %296, %cst_107 {dimension_numbers = #tpu.dot_dimension_numbers<[1], [0], [0], [1], [0, 0, 1, 1], [], []>} : vector<32x24xf32>, vector<24x32xf32>, vector<32x32xf32> -> vector<32x32xf32>
    %301 = arith.addf %299, %300 : vector<32x32xf32>
    %302 = vector.extract_strided_slice %301 {offsets = [0, 0], sizes = [8, 32], strides = [1, 1]} : vector<32x32xf32> to vector<8x32xf32>
    %cst_108 = arith.constant 5.000000e-01 : f32
    %303 = vector.broadcast %cst_108 : f32 to vector<8x32xf32>
    %304 = arith.mulf %303, %302 : vector<8x32xf32>
    %305 = math.tanh %304 : vector<8x32xf32>
    %cst_109 = arith.constant 5.000000e-01 : f32
    %306 = vector.broadcast %cst_109 : f32 to vector<8x32xf32>
    %307 = arith.mulf %306, %305 : vector<8x32xf32>
    %cst_110 = arith.constant 5.000000e-01 : f32
    %308 = vector.broadcast %cst_110 : f32 to vector<8x32xf32>
    %309 = arith.addf %307, %308 : vector<8x32xf32>
    %310 = vector.extract_strided_slice %301 {offsets = [8, 0], sizes = [8, 32], strides = [1, 1]} : vector<32x32xf32> to vector<8x32xf32>
    %cst_111 = arith.constant 5.000000e-01 : f32
    %311 = vector.broadcast %cst_111 : f32 to vector<8x32xf32>
    %312 = arith.mulf %311, %310 : vector<8x32xf32>
    %313 = math.tanh %312 : vector<8x32xf32>
    %cst_112 = arith.constant 5.000000e-01 : f32
    %314 = vector.broadcast %cst_112 : f32 to vector<8x32xf32>
    %315 = arith.mulf %314, %313 : vector<8x32xf32>
    %cst_113 = arith.constant 5.000000e-01 : f32
    %316 = vector.broadcast %cst_113 : f32 to vector<8x32xf32>
    %317 = arith.addf %315, %316 : vector<8x32xf32>
    %318 = vector.extract_strided_slice %301 {offsets = [16, 0], sizes = [8, 32], strides = [1, 1]} : vector<32x32xf32> to vector<8x32xf32>
    %cst_114 = arith.constant 5.000000e-01 : f32
    %319 = vector.broadcast %cst_114 : f32 to vector<8x32xf32>
    %320 = arith.mulf %319, %318 : vector<8x32xf32>
    %321 = math.tanh %320 : vector<8x32xf32>
    %cst_115 = arith.constant 5.000000e-01 : f32
    %322 = vector.broadcast %cst_115 : f32 to vector<8x32xf32>
    %323 = arith.mulf %322, %321 : vector<8x32xf32>
    %cst_116 = arith.constant 5.000000e-01 : f32
    %324 = vector.broadcast %cst_116 : f32 to vector<8x32xf32>
    %325 = arith.addf %323, %324 : vector<8x32xf32>
    %326 = vector.extract_strided_slice %301 {offsets = [24, 0], sizes = [8, 32], strides = [1, 1]} : vector<32x32xf32> to vector<8x32xf32>
    %327 = math.tanh %326 : vector<8x32xf32>
    %328 = arith.mulf %317, %289 : vector<8x32xf32>
    %329 = arith.mulf %309, %327 : vector<8x32xf32>
    %330 = arith.addf %328, %329 : vector<8x32xf32>
    %331 = math.tanh %330 : vector<8x32xf32>
    %332 = arith.mulf %325, %331 : vector<8x32xf32>
    %c8_i32 = arith.constant 8 : i32
    %333 = vector.extract_strided_slice %330 {offsets = [0, 0], sizes = [1, 16], strides = [1, 1]} : vector<8x32xf32> to vector<1x16xf32>
    %c0_117 = arith.constant 0 : index
    %c0_118 = arith.constant 0 : index
    %334 = vector.load %arg9[%c0_117, %c0_118] : memref<2x128xf32, #tpu.memory_space<vmem>>, vector<1x16xf32>
    tpu.vector_store %arg9[%c0_117, %c0_118], %333 {strides = array<i32>} : memref<2x128xf32, #tpu.memory_space<vmem>>, vector<1x16xf32>,
    %335 = vector.extract_strided_slice %330 {offsets = [1, 0], sizes = [1, 16], strides = [1, 1]} : vector<8x32xf32> to vector<1x16xf32>
    %c0_119 = arith.constant 0 : index
    %c16 = arith.constant 16 : index
    %336 = vector.load %arg9[%c0_119, %c16] : memref<2x128xf32, #tpu.memory_space<vmem>>, vector<1x16xf32>
    tpu.vector_store %arg9[%c0_119, %c16], %335 {strides = array<i32>} : memref<2x128xf32, #tpu.memory_space<vmem>>, vector<1x16xf32>,
    %337 = vector.extract_strided_slice %330 {offsets = [2, 0], sizes = [1, 16], strides = [1, 1]} : vector<8x32xf32> to vector<1x16xf32>
    %c0_120 = arith.constant 0 : index
    %c32 = arith.constant 32 : index
    %338 = vector.load %arg9[%c0_120, %c32] : memref<2x128xf32, #tpu.memory_space<vmem>>, vector<1x16xf32>
    tpu.vector_store %arg9[%c0_120, %c32], %337 {strides = array<i32>} : memref<2x128xf32, #tpu.memory_space<vmem>>, vector<1x16xf32>,
    %339 = vector.extract_strided_slice %330 {offsets = [3, 0], sizes = [1, 16], strides = [1, 1]} : vector<8x32xf32> to vector<1x16xf32>
    %c0_121 = arith.constant 0 : index
    %c48 = arith.constant 48 : index
    %340 = vector.load %arg9[%c0_121, %c48] : memref<2x128xf32, #tpu.memory_space<vmem>>, vector<1x16xf32>
    tpu.vector_store %arg9[%c0_121, %c48], %339 {strides = array<i32>} : memref<2x128xf32, #tpu.memory_space<vmem>>, vector<1x16xf32>,
    %341 = vector.extract_strided_slice %330 {offsets = [4, 0], sizes = [1, 16], strides = [1, 1]} : vector<8x32xf32> to vector<1x16xf32>
    %c0_122 = arith.constant 0 : index
    %c64 = arith.constant 64 : index
    %342 = vector.load %arg9[%c0_122, %c64] : memref<2x128xf32, #tpu.memory_space<vmem>>, vector<1x16xf32>
    tpu.vector_store %arg9[%c0_122, %c64], %341 {strides = array<i32>} : memref<2x128xf32, #tpu.memory_space<vmem>>, vector<1x16xf32>,
    %343 = vector.extract_strided_slice %330 {offsets = [5, 0], sizes = [1, 16], strides = [1, 1]} : vector<8x32xf32> to vector<1x16xf32>
    %c0_123 = arith.constant 0 : index
    %c80 = arith.constant 80 : index
    %344 = vector.load %arg9[%c0_123, %c80] : memref<2x128xf32, #tpu.memory_space<vmem>>, vector<1x16xf32>
    tpu.vector_store %arg9[%c0_123, %c80], %343 {strides = array<i32>} : memref<2x128xf32, #tpu.memory_space<vmem>>, vector<1x16xf32>,
    %345 = vector.extract_strided_slice %330 {offsets = [6, 0], sizes = [1, 16], strides = [1, 1]} : vector<8x32xf32> to vector<1x16xf32>
    %c0_124 = arith.constant 0 : index
    %c96 = arith.constant 96 : index
    %346 = vector.load %arg9[%c0_124, %c96] : memref<2x128xf32, #tpu.memory_space<vmem>>, vector<1x16xf32>
    tpu.vector_store %arg9[%c0_124, %c96], %345 {strides = array<i32>} : memref<2x128xf32, #tpu.memory_space<vmem>>, vector<1x16xf32>,
    %347 = vector.extract_strided_slice %330 {offsets = [7, 0], sizes = [1, 16], strides = [1, 1]} : vector<8x32xf32> to vector<1x16xf32>
    %c0_125 = arith.constant 0 : index
    %c112 = arith.constant 112 : index
    %348 = vector.load %arg9[%c0_125, %c112] : memref<2x128xf32, #tpu.memory_space<vmem>>, vector<1x16xf32>
    tpu.vector_store %arg9[%c0_125, %c112], %347 {strides = array<i32>} : memref<2x128xf32, #tpu.memory_space<vmem>>, vector<1x16xf32>,
    %349 = vector.extract_strided_slice %330 {offsets = [0, 16], sizes = [1, 16], strides = [1, 1]} : vector<8x32xf32> to vector<1x16xf32>
    %c1 = arith.constant 1 : index
    %c0_126 = arith.constant 0 : index
    %350 = vector.load %arg9[%c1, %c0_126] : memref<2x128xf32, #tpu.memory_space<vmem>>, vector<1x16xf32>
    tpu.vector_store %arg9[%c1, %c0_126], %349 {strides = array<i32>} : memref<2x128xf32, #tpu.memory_space<vmem>>, vector<1x16xf32>,
    %351 = vector.extract_strided_slice %330 {offsets = [1, 16], sizes = [1, 16], strides = [1, 1]} : vector<8x32xf32> to vector<1x16xf32>
    %c1_127 = arith.constant 1 : index
    %c16_128 = arith.constant 16 : index
    %352 = vector.load %arg9[%c1_127, %c16_128] : memref<2x128xf32, #tpu.memory_space<vmem>>, vector<1x16xf32>
    tpu.vector_store %arg9[%c1_127, %c16_128], %351 {strides = array<i32>} : memref<2x128xf32, #tpu.memory_space<vmem>>, vector<1x16xf32>,
    %353 = vector.extract_strided_slice %330 {offsets = [2, 16], sizes = [1, 16], strides = [1, 1]} : vector<8x32xf32> to vector<1x16xf32>
    %c1_129 = arith.constant 1 : index
    %c32_130 = arith.constant 32 : index
    %354 = vector.load %arg9[%c1_129, %c32_130] : memref<2x128xf32, #tpu.memory_space<vmem>>, vector<1x16xf32>
    tpu.vector_store %arg9[%c1_129, %c32_130], %353 {strides = array<i32>} : memref<2x128xf32, #tpu.memory_space<vmem>>, vector<1x16xf32>,
    %355 = vector.extract_strided_slice %330 {offsets = [3, 16], sizes = [1, 16], strides = [1, 1]} : vector<8x32xf32> to vector<1x16xf32>
    %c1_131 = arith.constant 1 : index
    %c48_132 = arith.constant 48 : index
    %356 = vector.load %arg9[%c1_131, %c48_132] : memref<2x128xf32, #tpu.memory_space<vmem>>, vector<1x16xf32>
    tpu.vector_store %arg9[%c1_131, %c48_132], %355 {strides = array<i32>} : memref<2x128xf32, #tpu.memory_space<vmem>>, vector<1x16xf32>,
    %357 = vector.extract_strided_slice %330 {offsets = [4, 16], sizes = [1, 16], strides = [1, 1]} : vector<8x32xf32> to vector<1x16xf32>
    %c1_133 = arith.constant 1 : index
    %c64_134 = arith.constant 64 : index
    %358 = vector.load %arg9[%c1_133, %c64_134] : memref<2x128xf32, #tpu.memory_space<vmem>>, vector<1x16xf32>
    tpu.vector_store %arg9[%c1_133, %c64_134], %357 {strides = array<i32>} : memref<2x128xf32, #tpu.memory_space<vmem>>, vector<1x16xf32>,
    %359 = vector.extract_strided_slice %330 {offsets = [5, 16], sizes = [1, 16], strides = [1, 1]} : vector<8x32xf32> to vector<1x16xf32>
    %c1_135 = arith.constant 1 : index
    %c80_136 = arith.constant 80 : index
    %360 = vector.load %arg9[%c1_135, %c80_136] : memref<2x128xf32, #tpu.memory_space<vmem>>, vector<1x16xf32>
    tpu.vector_store %arg9[%c1_135, %c80_136], %359 {strides = array<i32>} : memref<2x128xf32, #tpu.memory_space<vmem>>, vector<1x16xf32>,
    %361 = vector.extract_strided_slice %330 {offsets = [6, 16], sizes = [1, 16], strides = [1, 1]} : vector<8x32xf32> to vector<1x16xf32>
    %c1_137 = arith.constant 1 : index
    %c96_138 = arith.constant 96 : index
    %362 = vector.load %arg9[%c1_137, %c96_138] : memref<2x128xf32, #tpu.memory_space<vmem>>, vector<1x16xf32>
    tpu.vector_store %arg9[%c1_137, %c96_138], %361 {strides = array<i32>} : memref<2x128xf32, #tpu.memory_space<vmem>>, vector<1x16xf32>,
    %363 = vector.extract_strided_slice %330 {offsets = [7, 16], sizes = [1, 16], strides = [1, 1]} : vector<8x32xf32> to vector<1x16xf32>
    %c1_139 = arith.constant 1 : index
    %c112_140 = arith.constant 112 : index
    %364 = vector.load %arg9[%c1_139, %c112_140] : memref<2x128xf32, #tpu.memory_space<vmem>>, vector<1x16xf32>
    tpu.vector_store %arg9[%c1_139, %c112_140], %363 {strides = array<i32>} : memref<2x128xf32, #tpu.memory_space<vmem>>, vector<1x16xf32>,
    %c0_141 = arith.constant 0 : index
    %c0_142 = arith.constant 0 : index
    %365 = vector.load %arg9[%c0_141, %c0_142] : memref<2x128xf32, #tpu.memory_space<vmem>>, vector<2x128xf32>
    %c0_143 = arith.constant 0 : index
    %c0_144 = arith.constant 0 : index
    %366 = vector.load %arg4[%c0_143, %c0_144] : memref<128x32xf32, #tpu.memory_space<vmem>>, vector<128x32xf32>
    %cst_145 = arith.constant dense<0.000000e+00> : vector<2x32xf32>
    %367 = tpu.matmul %365, %366, %cst_145 {dimension_numbers = #tpu.dot_dimension_numbers<[1], [0], [0], [1], [0, 0, 1, 1], [], []>} : vector<2x128xf32>, vector<128x32xf32>, vector<2x32xf32> -> vector<2x32xf32>
    %c0_146 = arith.constant 0 : index
    %c0_147 = arith.constant 0 : index
    %368 = vector.load %arg5[%c0_146, %c0_147] : memref<1x32xf32, #tpu.memory_space<vmem>>, vector<1x32xf32>
    %369 = vector.broadcast %368 : vector<1x32xf32> to vector<2x32xf32>
    %370 = arith.addf %367, %369 : vector<2x32xf32>
    %cst_148 = arith.constant 0.000000e+00 : f32
    %371 = vector.broadcast %cst_148 : f32 to vector<2x32xf32>
    %372 = arith.maximumf %370, %371 : vector<2x32xf32>
    %373 = math.absf %370 : vector<2x32xf32>
    %cst_149 = arith.constant 0.000000e+00 : f32
    %374 = vector.broadcast %cst_149 : f32 to vector<2x32xf32>
    %375 = arith.subf %374, %373 : vector<2x32xf32>
    %376 = math.exp %375 : vector<2x32xf32>
    %cst_150 = arith.constant 1.000000e+00 : f32
    %377 = vector.broadcast %cst_150 : f32 to vector<2x32xf32>
    %378 = arith.addf %377, %376 : vector<2x32xf32>
    %379 = math.log %378 : vector<2x32xf32>
    %380 = arith.addf %372, %379 : vector<2x32xf32>
    %381 = math.tanh %380 : vector<2x32xf32>
    %382 = arith.mulf %370, %381 : vector<2x32xf32>
    %c0_151 = arith.constant 0 : index
    %c0_152 = arith.constant 0 : index
    %383 = vector.load %arg6[%c0_151, %c0_152] : memref<32x1xf32, #tpu.memory_space<vmem>>, vector<32x1xf32>
    %cst_153 = arith.constant dense<0.000000e+00> : vector<2x1xf32>
    %384 = tpu.matmul %382, %383, %cst_153 {dimension_numbers = #tpu.dot_dimension_numbers<[1], [0], [0], [1], [0, 0, 1, 1], [], []>} : vector<2x32xf32>, vector<32x1xf32>, vector<2x1xf32> -> vector<2x1xf32>
    %c0_154 = arith.constant 0 : index
    %c0_155 = arith.constant 0 : index
    %385 = vector.load %arg7[%c0_154, %c0_155] : memref<1x1xf32, #tpu.memory_space<vmem>>, vector<1x1xf32>
    %386 = vector.broadcast %385 : vector<1x1xf32> to vector<2x1xf32>
    %387 = arith.addf %384, %386 : vector<2x1xf32>
    %cst_156 = arith.constant 5.000000e-01 : f32
    %388 = vector.broadcast %cst_156 : f32 to vector<2x1xf32>
    %389 = arith.mulf %388, %387 : vector<2x1xf32>
    %390 = math.tanh %389 : vector<2x1xf32>
    %cst_157 = arith.constant 5.000000e-01 : f32
    %391 = vector.broadcast %cst_157 : f32 to vector<2x1xf32>
    %392 = arith.mulf %391, %390 : vector<2x1xf32>
    %cst_158 = arith.constant 5.000000e-01 : f32
    %393 = vector.broadcast %cst_158 : f32 to vector<2x1xf32>
    %394 = arith.addf %392, %393 : vector<2x1xf32>
    %c0_159 = arith.constant 0 : index
    %c0_160 = arith.constant 0 : index
    %395 = vector.load %arg8[%c0_159, %c0_160] : memref<2x1xf32, #tpu.memory_space<vmem>>, vector<2x1xf32>
    tpu.vector_store %arg8[%c0_159, %c0_160], %394 {strides = array<i32>} : memref<2x1xf32, #tpu.memory_space<vmem>>, vector<2x1xf32>,
    return
  }
}

</mosaic_0001>

<bundles_post_ra>
// kernel: tpu_custom_call.1
= control target key start
LH: loop header
LB: loop body
LE: loop exit
PB: predicated region body
PF: predicated region fallthrough
CT: control target
= control target key end

     0   :  { %s2119_s0 = inlined_call_operand.hbm [shape: f32[8,32,32], index: 0, kind: input, shape index: {}]   ;;  %s2120_s1 = inlined_call_operand.vmem [shape: f32[32,24], index: 1, kind: input, shape index: {}]   ;;  %s2121_s2 = inlined_call_operand.vmem [shape: f32[8,32], index: 2, kind: input, shape index: {}]   ;;  %s2122_s3 = inlined_call_operand.vmem [shape: f32[8,32], index: 3, kind: input, shape index: {}]   ;;  %s2123_s4 = inlined_call_operand.vmem [shape: f32[128,32], index: 4, kind: input, shape index: {}]   ;;  %s2124_s5 = inlined_call_operand.vmem [shape: f32[1,32], index: 5, kind: input, shape index: {}]   ;;  %s2125_s6 = inlined_call_operand.vmem [shape: f32[32,1], index: 6, kind: input, shape index: {}]   ;;  %s2126_s7 = inlined_call_operand.<no memory space> [shape: f32[1,1], index: 7, kind: input, shape index: {}]   ;;  %s2127_s8 = inlined_call_operand.vmem [shape: f32[2,1], index: 8, kind: output, shape index: {}]  }
   0x1   :  { %v13_v0 = vstv %s2126_s7 }
   0x2   :  { %14 = vst [vmem:[#allocation3] sm:$0x1] %v13_v0 }
   0x3   :  { %15 = vsyncpa [#allocation5], 0  ;;  %s1773_s29 = smov [#allocation4]  }
   0x4   :  { %s21_s30 = sshll.u32 %s1773_s29, 4  ;;  %s22_s30 = int_to_ptr.vmem [resolvable:$true] %s21_s30 }
   0x5   :  { %s1759_s9 = scalar_lea.vmem %s22_s30, 4096  ;;  %p1764_p1 = scmp.lt.s32.totalorder %s22_s30, %s22_s30 }
   0x6   :  { %p1760_p0 = scmp.ne.s32.totalorder %s22_s30, %s1759_s9  ;;  %p1765_p2 = scmp.lt.s32.totalorder %s1759_s9, %s1759_s9 }
   0x8   :  { %p1766_p3 = por %p1765_p2, %p1764_p1 }
   0xa   :  { %p1767_p4 = pnand %p1766_p3, %p1760_p0 }
   0xc   :  { %1770 = shalt.err (!%p1767_p4)
}
   0xd   :  { %s1774_s10 = smov 128   ;;  %s1775_s11 = smov 8  }
   0xe   :  { %27 = dma.hbm_to_vmem [thread:$0]  %s2119_s0, 4096, %s22_s30, [#allocation5], %s1774_s10, %s1774_s10, %s1775_s11  }
   0xf   :  { %1771 = dma.done.wait [#allocation5], 4096  }
  0x10   :  { %1772 = vsyncadd [#allocation5], 4294963200  ;;  %v1776_v1 = vmov 0.0   ;;  %s1777_s7 = smov 32   ;;  %v50_v2 = vld [vmem:[%s2122_s3] sm:$0xff]  ;;  %s1778_s16 = smov 1  }
  0x11   :  { %52 = vrot.lane.b32.xlu0 %v1776_v1, %s1777_s7  ;;  %64 = vrot.lane.b32.xlu1 %v50_v2, %s1778_s16  ;;  %vm51_vm0 = vcmask 1047808   ;;  %v49_v5 = vld [vmem:[%s2121_s2] sm:$0xff]  ;;  %s1779_s18 = smov 31   ;;  %s1780_s19 = smov 97   ;;  %vm86_vm1 = vcmask 195584   ;;  %v1875_v17 = vld [vmem:[%s2120_s1 + $0x8] sm:$0xff] }
  0x12   :  { %s1781_s3 = smov 30   ;;  %v1861_v10 = vld [vmem:[%s2120_s1] sm:$0xff]  ;;  %v1880_v18 = vld [vmem:[%s2120_s1 + $0x10] sm:$0xff]  ;;  %v1889_v19 = vld [vmem:[%s2120_s1 + $0x18] sm:$0xff]  ;;  %vm1149_vm2 = vcmask 122880   ;;  %s1782_s25 = smov 16  }
  0x13   :  { %1515 = vmatprep.mubr.msk.f32.mxu1 %vm86_vm1, %v1861_v10  ;;  %1539 = vmatprep.mubr.msk.f32.mxu0 %vm86_vm1, %v1861_v10  ;;  %v72_v20 = vld [vmem:[#allocation4 + $0x8] sm:$0xff]  ;;  %v71_v22 = vld [vmem:[#allocation4] sm:$0xff]  ;;  %v74_v25 = vld [vmem:[#allocation4 + $0x18] sm:$0xff]  ;;  %s1783_s26 = smov 112   ;;  %vm1784_vm3 = vmmov 0   ;;  %s1785_s30 = smov 48  }
  0x14   :  { %v73_v31 = vld [vmem:[#allocation4 + $0x10] sm:$0xff]  ;;  %v222_v61 = vld [vmem:[#allocation4 + $0x28] sm:$0xff]  ;;  %v221_v63 = vld [vmem:[#allocation4 + $0x20] sm:$0xff]  ;;  %s1786_s13 = smov 80   ;;  %s1787_s14 = smov 64   ;;  %vm1155_vm4 = vcmask 255105  }
  0x15   :  { %vm1160_vm5 = vcmask 387330   ;;  %vm1165_vm6 = vcmask 519555   ;;  %vm1170_vm7 = vcmask 651780   ;;  %vm1175_vm8 = vcmask 784005  }
  0x16   :  { %vm1180_vm9 = vcmask 916230   ;;  %vm1185_vm10 = vcmask 1048455   ;;  %vm1311_vm11 = vcmask 261120   ;;  %vm1389_vm12 = vcmask 1024  }
  0x83   :  { %v53_v3 = vpop.permute.xlu0 %52  ;;  %v1853_v6 = vpop.permute.xlu1 %64 }
  0x84   :  { %v54_v4 = vsel %vm51_vm0, %v53_v3, 0.0  ;;  %v224_v3 = vld [vmem:[#allocation4 + $0x38] sm:$0xff] }
  0x85   :  { %55 = vrot.lane.b32.xlu0 %v54_v4, %s1777_s7 }
  0x89   :  { %59 = vrot.lane.b32.xlu0 %v49_v5, %s1779_s18 }
  0x8d   :  { %79 = vrot.lane.b32.xlu0 %v1776_v1, %s1780_s19 }
  0xf7   :  { %v56_v7 = vpop.permute.xlu0 %55 }
  0xf8   :  { %v57_v8 = vsel %vm51_vm0, %v56_v7, 0.0 }
  0xf9   :  { %v67_v9 = vmul.f32 %v1853_v6, %v57_v8 }
  0xfb   :  { %69 = vrot.lane.b32.xlu1 %v67_v9, %s1781_s3  ;;  %v1867_v11 = vpop.permute.xlu0 %59 }
  0xfc   :  { %v62_v13 = vmul.f32 %v1867_v11, %v57_v8 }
  0xff   :  { %v80_v15 = vpop.permute.xlu0 %79 }
 0x16d   :  { %v70_v12 = vpop.permute.xlu1 %69 }
 0x16e   :  { %81 = vrot.lane.b32.xlu1 %v70_v12, %s1780_s19  ;;  %v223_v12 = vld [vmem:[#allocation4 + $0x30] sm:$0xff] }
 0x172   :  { %77 = vrot.lane.b32.xlu1 %v62_v13, %s1780_s19 }
 0x1e0   :  { %v82_v14 = vpop.permute.xlu1 %81 }
 0x1e1   :  { %1509 = vmatprep.subr.mxu1 %v82_v14 }
 0x1e2   :  { %1510 = vmatpush3.msra.mxu1 %v82_v14 }
 0x1e3   :  { %1511 = vmatprep.subr.mxu1 %v80_v15 }
 0x1e4   :  { %v78_v16 = vpop.permute.xlu1 %77  ;;  %1512 = vmatpush3.msra.mxu1 %v80_v15 }
 0x1e5   :  { %1513 = vmatprep.subr.mxu1 %v78_v16 }
 0x1e6   :  { %1514 = vmatpush3.msra.mxu1 %v78_v16 }
 0x1e7   :  { %1516 = vmatmul.mubr.msk.f32.vlgmr.msra.gmra.mxu1 %vm86_vm1, %v1875_v17 }
 0x1e8   :  { %1518 = vmatprep.mubr.msk.f32.mxu1 %vm86_vm1, %v1880_v18 }
 0x1eb   :  { %1519 = vmatmul.mubr.msk.f32.gmra.mxu1 %vm86_vm1, %v1889_v19 }
 0x1ec   :  { %1527 = vmatprep.mubr.msk.f32.mxu1 %vm86_vm1, %v1861_v10 }
 0x2a7   :  { %v1517_v21 = vpop.f32.mrf.mxu1 }
 0x2a8   :  { %v185_v23 = vadd.f32 %v1517_v21, %v72_v20 }
 0x2a9   :  { %v165_v24 = vpop.f32.mrf.mxu1 }
 0x2aa   :  { %v192_v26 = vmul.f32 0.5, %v185_v23  ;;  %v184_v27 = vadd.f32 %v165_v24, %v71_v22 }
 0x2ab   :  { %v1520_v28 = vpop.f32.mrf.mxu1 }
 0x2ac   :  { %1667 = vtanh.f32 %v192_v26  ;;  %v188_v29 = vmul.f32 0.5, %v184_v27  ;;  %v187_v30 = vadd.f32 %v1520_v28, %v74_v25 }
 0x2ad   :  { %v175_v32 = vpop.f32.mrf.mxu1 }
 0x2ae   :  { %1669 = vtanh.f32 %v188_v29  ;;  %v186_v33 = vadd.f32 %v175_v32, %v73_v31 }
 0x2af   :  { %1671 = vtanh.f32 %v187_v30 }
 0x2b0   :  { %v196_v34 = vmul.f32 0.5, %v186_v33 }
 0x2b2   :  { %1673 = vtanh.f32 %v196_v34 }
 0x2b9   :  { %v1668_v35 = vpop.eup %1667 }
 0x2ba   :  { %v194_v36 = vmul.f32 0.5, %v1668_v35 }
 0x2bb   :  { %v1670_v37 = vpop.eup %1669 }
 0x2bc   :  { %v195_v38 = vadd.f32 0.5, %v194_v36  ;;  %v190_v39 = vmul.f32 0.5, %v1670_v37  ;;  %v1672_v40 = vpop.eup %1671 }
 0x2be   :  { %v191_v41 = vadd.f32 0.5, %v190_v39  ;;  %v201_v42 = vmul.f32 0.0, %v195_v38 }
 0x2bf   :  { %v1674_v45 = vpop.eup %1673 }
 0x2c0   :  { %v202_v43 = vmul.f32 %v1672_v40, %v191_v41  ;;  %v198_v46 = vmul.f32 0.5, %v1674_v45  ;;  %v358_v45 = vld [vmem:[#allocation4 + $0x48] sm:$0xff] }
 0x2c2   :  { %v203_v44 = vadd.f32 %v202_v43, %v201_v42  ;;  %v199_v47 = vadd.f32 0.5, %v198_v46 }
 0x2c4   :  { %1675 = vtanh.f32 %v203_v44 }
 0x2d1   :  { %v1676_v48 = vpop.eup %1675 }
 0x2d2   :  { %v205_v49 = vmul.f32 %v1676_v48, %v199_v47  ;;  %v357_v47 = vld [vmem:[#allocation4 + $0x40] sm:$0xff] }
 0x2d4   :  { %206 = vrot.lane.b32.xlu0 %v205_v49, %s1777_s7 }
 0x346   :  { %v207_v50 = vpop.permute.xlu0 %206 }
 0x347   :  { %v208_v51 = vsel %vm51_vm0, %v207_v50, %v205_v49  ;;  %v360_v50 = vld [vmem:[#allocation4 + $0x58] sm:$0xff] }
 0x348   :  { %209 = vrot.lane.b32.xlu1 %v208_v51, %s1777_s7 }
 0x34c   :  { %215 = vrot.lane.b32.xlu1 %v205_v49, %s1779_s18 }
 0x3ba   :  { %v210_v52 = vpop.permute.xlu1 %209 }
 0x3bb   :  { %v211_v53 = vsel %vm51_vm0, %v210_v52, %v205_v49 }
 0x3bc   :  { %v213_v54 = vmul.f32 %v211_v53, %v1853_v6  ;;  %v212_v57 = vmul.f32 %v211_v53, %v1867_v11 }
 0x3be   :  { %218 = vrot.lane.b32.xlu0 %v213_v54, %s1781_s3  ;;  %v216_v55 = vpop.permute.xlu1 %215 }
 0x3bf   :  { %228 = vrot.lane.b32.xlu1 %v216_v55, %s1780_s19 }
 0x430   :  { %v219_v56 = vpop.permute.xlu0 %218 }
 0x431   :  { %230 = vrot.lane.b32.xlu0 %v219_v56, %s1780_s19  ;;  %v229_v59 = vpop.permute.xlu1 %228  ;;  %v359_v56 = vld [vmem:[#allocation4 + $0x50] sm:$0xff] }
 0x435   :  { %226 = vrot.lane.b32.xlu0 %v212_v57, %s1780_s19 }
 0x4a3   :  { %v231_v58 = vpop.permute.xlu0 %230 }
 0x4a4   :  { %1521 = vmatprep.subr.mxu1 %v231_v58 }
 0x4a5   :  { %1522 = vmatpush3.msra.mxu1 %v231_v58 }
 0x4a6   :  { %1523 = vmatprep.subr.mxu1 %v229_v59 }
 0x4a7   :  { %v227_v60 = vpop.permute.xlu0 %226  ;;  %1524 = vmatpush3.msra.mxu1 %v229_v59 }
 0x4a8   :  { %1525 = vmatprep.subr.mxu1 %v227_v60 }
 0x4a9   :  { %1526 = vmatpush3.msra.mxu1 %v227_v60 }
 0x4aa   :  { %1528 = vmatmul.mubr.msk.f32.vlgmr.msra.gmra.mxu1 %vm86_vm1, %v1875_v17 }
 0x4ab   :  { %1530 = vmatprep.mubr.msk.f32.mxu1 %vm86_vm1, %v1880_v18 }
 0x4ae   :  { %1531 = vmatmul.mubr.msk.f32.gmra.mxu1 %vm86_vm1, %v1889_v19 }
 0x4af   :  { %1551 = vmatprep.mubr.msk.f32.mxu1 %vm86_vm1, %v1861_v10 }
 0x56a   :  { %v1529_v62 = vpop.f32.mrf.mxu1 }
 0x56b   :  { %v321_v0 = vadd.f32 %v1529_v62, %v222_v61 }
 0x56c   :  { %v301_v2 = vpop.f32.mrf.mxu1 }
 0x56d   :  { %v328_v4 = vmul.f32 0.5, %v321_v0  ;;  %v320_v5 = vadd.f32 %v301_v2, %v221_v63 }
 0x56e   :  { %v1532_v7 = vpop.f32.mrf.mxu1 }
 0x56f   :  { %1677 = vtanh.f32 %v328_v4  ;;  %v324_v8 = vmul.f32 0.5, %v320_v5  ;;  %v323_v9 = vadd.f32 %v1532_v7, %v224_v3 }
 0x570   :  { %v311_v13 = vpop.f32.mrf.mxu1 }
 0x571   :  { %1679 = vtanh.f32 %v324_v8  ;;  %v322_v14 = vadd.f32 %v311_v13, %v223_v12 }
 0x572   :  { %1681 = vtanh.f32 %v323_v9 }
 0x573   :  { %v332_v15 = vmul.f32 0.5, %v322_v14 }
 0x575   :  { %1683 = vtanh.f32 %v332_v15 }
 0x57c   :  { %v1678_v16 = vpop.eup %1677 }
 0x57d   :  { %v330_v20 = vmul.f32 0.5, %v1678_v16 }
 0x57e   :  { %v1680_v21 = vpop.eup %1679 }
 0x57f   :  { %v331_v22 = vadd.f32 0.5, %v330_v20  ;;  %v326_v23 = vmul.f32 0.5, %v1680_v21  ;;  %v1682_v24 = vpop.eup %1681 }
 0x581   :  { %v327_v25 = vadd.f32 0.5, %v326_v23  ;;  %v337_v26 = vmul.f32 %v331_v22, %v203_v44 }
 0x582   :  { %v1684_v29 = vpop.eup %1683 }
 0x583   :  { %v338_v27 = vmul.f32 %v1682_v24, %v327_v25  ;;  %v334_v30 = vmul.f32 0.5, %v1684_v29  ;;  %v494_v29 = vld [vmem:[#allocation4 + $0x68] sm:$0xff] }
 0x585   :  { %v339_v28 = vadd.f32 %v338_v27, %v337_v26  ;;  %v335_v31 = vadd.f32 0.5, %v334_v30 }
 0x587   :  { %1685 = vtanh.f32 %v339_v28 }
 0x594   :  { %v1686_v32 = vpop.eup %1685 }
 0x595   :  { %v341_v33 = vmul.f32 %v1686_v32, %v335_v31  ;;  %v493_v31 = vld [vmem:[#allocation4 + $0x60] sm:$0xff] }
 0x597   :  { %342 = vrot.lane.b32.xlu1 %v341_v33, %s1777_s7 }
 0x609   :  { %v343_v34 = vpop.permute.xlu1 %342 }
 0x60a   :  { %v344_v35 = vsel %vm51_vm0, %v343_v34, %v341_v33  ;;  %v496_v34 = vld [vmem:[#allocation4 + $0x78] sm:$0xff] }
 0x60b   :  { %345 = vrot.lane.b32.xlu0 %v344_v35, %s1777_s7 }
 0x60f   :  { %351 = vrot.lane.b32.xlu0 %v341_v33, %s1779_s18 }
 0x67d   :  { %v346_v36 = vpop.permute.xlu0 %345 }
 0x67e   :  { %v347_v37 = vsel %vm51_vm0, %v346_v36, %v341_v33 }
 0x67f   :  { %v349_v38 = vmul.f32 %v347_v37, %v1853_v6  ;;  %v348_v41 = vmul.f32 %v347_v37, %v1867_v11 }
 0x681   :  { %354 = vrot.lane.b32.xlu1 %v349_v38, %s1781_s3  ;;  %v352_v39 = vpop.permute.xlu0 %351 }
 0x682   :  { %364 = vrot.lane.b32.xlu0 %v352_v39, %s1780_s19 }
 0x6f3   :  { %v355_v40 = vpop.permute.xlu1 %354 }
 0x6f4   :  { %366 = vrot.lane.b32.xlu1 %v355_v40, %s1780_s19  ;;  %v365_v43 = vpop.permute.xlu0 %364  ;;  %v495_v40 = vld [vmem:[#allocation4 + $0x70] sm:$0xff] }
 0x6f8   :  { %362 = vrot.lane.b32.xlu1 %v348_v41, %s1780_s19 }
 0x766   :  { %v367_v42 = vpop.permute.xlu1 %366 }
 0x767   :  { %1533 = vmatprep.subr.mxu0 %v367_v42 }
 0x768   :  { %1534 = vmatpush3.msra.mxu0 %v367_v42 }
 0x769   :  { %1535 = vmatprep.subr.mxu0 %v365_v43 }
 0x76a   :  { %v363_v44 = vpop.permute.xlu1 %362  ;;  %1536 = vmatpush3.msra.mxu0 %v365_v43 }
 0x76b   :  { %1537 = vmatprep.subr.mxu0 %v363_v44 }
 0x76c   :  { %1538 = vmatpush3.msra.mxu0 %v363_v44 }
 0x76d   :  { %1540 = vmatmul.mubr.msk.f32.vlgmr.msra.gmra.mxu0 %vm86_vm1, %v1875_v17 }
 0x76e   :  { %1542 = vmatprep.mubr.msk.f32.mxu0 %vm86_vm1, %v1880_v18 }
 0x771   :  { %1543 = vmatmul.mubr.msk.f32.gmra.mxu0 %vm86_vm1, %v1889_v19 }
 0x772   :  { %1563 = vmatprep.mubr.msk.f32.mxu0 %vm86_vm1, %v1861_v10 }
 0x82d   :  { %v1541_v46 = vpop.f32.mrf.mxu0 }
 0x82e   :  { %v457_v48 = vadd.f32 %v1541_v46, %v358_v45 }
 0x82f   :  { %v437_v49 = vpop.f32.mrf.mxu0 }
 0x830   :  { %v464_v51 = vmul.f32 0.5, %v457_v48  ;;  %v456_v52 = vadd.f32 %v437_v49, %v357_v47 }
 0x831   :  { %v1544_v53 = vpop.f32.mrf.mxu0 }
 0x832   :  { %1687 = vtanh.f32 %v464_v51  ;;  %v460_v54 = vmul.f32 0.5, %v456_v52  ;;  %v459_v55 = vadd.f32 %v1544_v53, %v360_v50 }
 0x833   :  { %v447_v57 = vpop.f32.mrf.mxu0 }
 0x834   :  { %1689 = vtanh.f32 %v460_v54  ;;  %v458_v58 = vadd.f32 %v447_v57, %v359_v56 }
 0x835   :  { %1691 = vtanh.f32 %v459_v55 }
 0x836   :  { %v468_v59 = vmul.f32 0.5, %v458_v58 }
 0x838   :  { %1693 = vtanh.f32 %v468_v59 }
 0x83f   :  { %v1688_v60 = vpop.eup %1687 }
 0x840   :  { %v466_v61 = vmul.f32 0.5, %v1688_v60 }
 0x841   :  { %v1690_v62 = vpop.eup %1689 }
 0x842   :  { %v467_v63 = vadd.f32 0.5, %v466_v61  ;;  %v462_v0 = vmul.f32 0.5, %v1690_v62  ;;  %v1692_v2 = vpop.eup %1691 }
 0x844   :  { %v463_v3 = vadd.f32 0.5, %v462_v0  ;;  %v473_v4 = vmul.f32 %v467_v63, %v339_v28 }
 0x845   :  { %v1694_v8 = vpop.eup %1693 }
 0x846   :  { %v474_v5 = vmul.f32 %v1692_v2, %v463_v3  ;;  %v470_v9 = vmul.f32 0.5, %v1694_v8  ;;  %v630_v8 = vld [vmem:[#allocation4 + $0x88] sm:$0xff] }
 0x848   :  { %v475_v7 = vadd.f32 %v474_v5, %v473_v4  ;;  %v471_v12 = vadd.f32 0.5, %v470_v9 }
 0x84a   :  { %1695 = vtanh.f32 %v475_v7 }
 0x857   :  { %v1696_v13 = vpop.eup %1695 }
 0x858   :  { %v477_v14 = vmul.f32 %v1696_v13, %v471_v12  ;;  %v629_v12 = vld [vmem:[#allocation4 + $0x80] sm:$0xff] }
 0x85a   :  { %478 = vrot.lane.b32.xlu0 %v477_v14, %s1777_s7 }
 0x8cc   :  { %v479_v15 = vpop.permute.xlu0 %478 }
 0x8cd   :  { %v480_v16 = vsel %vm51_vm0, %v479_v15, %v477_v14  ;;  %v632_v15 = vld [vmem:[#allocation4 + $0x98] sm:$0xff] }
 0x8ce   :  { %481 = vrot.lane.b32.xlu1 %v480_v16, %s1777_s7 }
 0x8d2   :  { %487 = vrot.lane.b32.xlu1 %v477_v14, %s1779_s18 }
 0x940   :  { %v482_v20 = vpop.permute.xlu1 %481 }
 0x941   :  { %v483_v21 = vsel %vm51_vm0, %v482_v20, %v477_v14 }
 0x942   :  { %v485_v22 = vmul.f32 %v483_v21, %v1853_v6  ;;  %v484_v25 = vmul.f32 %v483_v21, %v1867_v11 }
 0x944   :  { %490 = vrot.lane.b32.xlu0 %v485_v22, %s1781_s3  ;;  %v488_v23 = vpop.permute.xlu1 %487 }
 0x945   :  { %500 = vrot.lane.b32.xlu1 %v488_v23, %s1780_s19 }
 0x9b6   :  { %v491_v24 = vpop.permute.xlu0 %490 }
 0x9b7   :  { %502 = vrot.lane.b32.xlu0 %v491_v24, %s1780_s19  ;;  %v501_v27 = vpop.permute.xlu1 %500  ;;  %v631_v24 = vld [vmem:[#allocation4 + $0x90] sm:$0xff] }
 0x9bb   :  { %498 = vrot.lane.b32.xlu0 %v484_v25, %s1780_s19 }
 0xa29   :  { %v503_v26 = vpop.permute.xlu0 %502 }
 0xa2a   :  { %1545 = vmatprep.subr.mxu1 %v503_v26 }
 0xa2b   :  { %1546 = vmatpush3.msra.mxu1 %v503_v26 }
 0xa2c   :  { %1547 = vmatprep.subr.mxu1 %v501_v27 }
 0xa2d   :  { %v499_v28 = vpop.permute.xlu0 %498  ;;  %1548 = vmatpush3.msra.mxu1 %v501_v27 }
 0xa2e   :  { %1549 = vmatprep.subr.mxu1 %v499_v28 }
 0xa2f   :  { %1550 = vmatpush3.msra.mxu1 %v499_v28 }
 0xa30   :  { %1552 = vmatmul.mubr.msk.f32.vlgmr.msra.gmra.mxu1 %vm86_vm1, %v1875_v17 }
 0xa31   :  { %1554 = vmatprep.mubr.msk.f32.mxu1 %vm86_vm1, %v1880_v18 }
 0xa34   :  { %1555 = vmatmul.mubr.msk.f32.gmra.mxu1 %vm86_vm1, %v1889_v19 }
 0xa35   :  { %1575 = vmatprep.mubr.msk.f32.mxu1 %vm86_vm1, %v1861_v10 }
 0xaf0   :  { %v1553_v30 = vpop.f32.mrf.mxu1 }
 0xaf1   :  { %v593_v32 = vadd.f32 %v1553_v30, %v494_v29 }
 0xaf2   :  { %v573_v33 = vpop.f32.mrf.mxu1 }
 0xaf3   :  { %v600_v35 = vmul.f32 0.5, %v593_v32  ;;  %v592_v36 = vadd.f32 %v573_v33, %v493_v31 }
 0xaf4   :  { %v1556_v37 = vpop.f32.mrf.mxu1 }
 0xaf5   :  { %1697 = vtanh.f32 %v600_v35  ;;  %v596_v38 = vmul.f32 0.5, %v592_v36  ;;  %v595_v39 = vadd.f32 %v1556_v37, %v496_v34 }
 0xaf6   :  { %v583_v41 = vpop.f32.mrf.mxu1 }
 0xaf7   :  { %1699 = vtanh.f32 %v596_v38  ;;  %v594_v42 = vadd.f32 %v583_v41, %v495_v40 }
 0xaf8   :  { %1701 = vtanh.f32 %v595_v39 }
 0xaf9   :  { %v604_v43 = vmul.f32 0.5, %v594_v42 }
 0xafb   :  { %1703 = vtanh.f32 %v604_v43 }
 0xb02   :  { %v1698_v44 = vpop.eup %1697 }
 0xb03   :  { %v602_v45 = vmul.f32 0.5, %v1698_v44 }
 0xb04   :  { %v1700_v46 = vpop.eup %1699 }
 0xb05   :  { %v603_v47 = vadd.f32 0.5, %v602_v45  ;;  %v598_v48 = vmul.f32 0.5, %v1700_v46  ;;  %v1702_v49 = vpop.eup %1701 }
 0xb07   :  { %v599_v50 = vadd.f32 0.5, %v598_v48  ;;  %v609_v51 = vmul.f32 %v603_v47, %v475_v7 }
 0xb08   :  { %v1704_v54 = vpop.eup %1703 }
 0xb09   :  { %v610_v52 = vmul.f32 %v1702_v49, %v599_v50  ;;  %v606_v55 = vmul.f32 0.5, %v1704_v54  ;;  %v766_v54 = vld [vmem:[#allocation4 + $0xa8] sm:$0xff] }
 0xb0b   :  { %v611_v53 = vadd.f32 %v610_v52, %v609_v51  ;;  %v607_v56 = vadd.f32 0.5, %v606_v55 }
 0xb0d   :  { %1705 = vtanh.f32 %v611_v53 }
 0xb1a   :  { %v1706_v57 = vpop.eup %1705 }
 0xb1b   :  { %v613_v58 = vmul.f32 %v1706_v57, %v607_v56  ;;  %v765_v56 = vld [vmem:[#allocation4 + $0xa0] sm:$0xff] }
 0xb1d   :  { %614 = vrot.lane.b32.xlu1 %v613_v58, %s1777_s7 }
 0xb8f   :  { %v615_v59 = vpop.permute.xlu1 %614 }
 0xb90   :  { %v616_v60 = vsel %vm51_vm0, %v615_v59, %v613_v58  ;;  %v768_v59 = vld [vmem:[#allocation4 + $0xb8] sm:$0xff] }
 0xb91   :  { %617 = vrot.lane.b32.xlu0 %v616_v60, %s1777_s7 }
 0xb95   :  { %623 = vrot.lane.b32.xlu0 %v613_v58, %s1779_s18 }
 0xc03   :  { %v618_v61 = vpop.permute.xlu0 %617 }
 0xc04   :  { %v619_v62 = vsel %vm51_vm0, %v618_v61, %v613_v58 }
 0xc05   :  { %v621_v63 = vmul.f32 %v619_v62, %v1853_v6  ;;  %v620_v3 = vmul.f32 %v619_v62, %v1867_v11 }
 0xc07   :  { %626 = vrot.lane.b32.xlu1 %v621_v63, %s1781_s3  ;;  %v624_v0 = vpop.permute.xlu0 %623 }
 0xc08   :  { %636 = vrot.lane.b32.xlu0 %v624_v0, %s1780_s19 }
 0xc79   :  { %v627_v2 = vpop.permute.xlu1 %626 }
 0xc7a   :  { %638 = vrot.lane.b32.xlu1 %v627_v2, %s1780_s19  ;;  %v637_v5 = vpop.permute.xlu0 %636  ;;  %v767_v2 = vld [vmem:[#allocation4 + $0xb0] sm:$0xff] }
 0xc7e   :  { %634 = vrot.lane.b32.xlu1 %v620_v3, %s1780_s19 }
 0xcec   :  { %v639_v4 = vpop.permute.xlu1 %638 }
 0xced   :  { %1557 = vmatprep.subr.mxu0 %v639_v4 }
 0xcee   :  { %1558 = vmatpush3.msra.mxu0 %v639_v4 }
 0xcef   :  { %1559 = vmatprep.subr.mxu0 %v637_v5 }
 0xcf0   :  { %v635_v7 = vpop.permute.xlu1 %634  ;;  %1560 = vmatpush3.msra.mxu0 %v637_v5 }
 0xcf1   :  { %1561 = vmatprep.subr.mxu0 %v635_v7 }
 0xcf2   :  { %1562 = vmatpush3.msra.mxu0 %v635_v7 }
 0xcf3   :  { %1564 = vmatmul.mubr.msk.f32.vlgmr.msra.gmra.mxu0 %vm86_vm1, %v1875_v17 }
 0xcf4   :  { %1566 = vmatprep.mubr.msk.f32.mxu0 %vm86_vm1, %v1880_v18 }
 0xcf7   :  { %1567 = vmatmul.mubr.msk.f32.gmra.mxu0 %vm86_vm1, %v1889_v19 }
 0xcf8   :  { %1587 = vmatprep.mubr.msk.f32.mxu0 %vm86_vm1, %v1861_v10 }
 0xdb3   :  { %v1565_v9 = vpop.f32.mrf.mxu0 }
 0xdb4   :  { %v729_v13 = vadd.f32 %v1565_v9, %v630_v8 }
 0xdb5   :  { %v709_v14 = vpop.f32.mrf.mxu0 }
 0xdb6   :  { %v736_v16 = vmul.f32 0.5, %v729_v13  ;;  %v728_v20 = vadd.f32 %v709_v14, %v629_v12 }
 0xdb7   :  { %v1568_v21 = vpop.f32.mrf.mxu0 }
 0xdb8   :  { %1707 = vtanh.f32 %v736_v16  ;;  %v732_v22 = vmul.f32 0.5, %v728_v20  ;;  %v731_v23 = vadd.f32 %v1568_v21, %v632_v15 }
 0xdb9   :  { %v719_v25 = vpop.f32.mrf.mxu0 }
 0xdba   :  { %1709 = vtanh.f32 %v732_v22  ;;  %v730_v26 = vadd.f32 %v719_v25, %v631_v24 }
 0xdbb   :  { %1711 = vtanh.f32 %v731_v23 }
 0xdbc   :  { %v740_v27 = vmul.f32 0.5, %v730_v26 }
 0xdbe   :  { %1713 = vtanh.f32 %v740_v27 }
 0xdc5   :  { %v1708_v28 = vpop.eup %1707 }
 0xdc6   :  { %v738_v29 = vmul.f32 0.5, %v1708_v28 }
 0xdc7   :  { %v1710_v30 = vpop.eup %1709 }
 0xdc8   :  { %v739_v31 = vadd.f32 0.5, %v738_v29  ;;  %v734_v32 = vmul.f32 0.5, %v1710_v30  ;;  %v1712_v33 = vpop.eup %1711 }
 0xdca   :  { %v735_v34 = vadd.f32 0.5, %v734_v32  ;;  %v745_v35 = vmul.f32 %v739_v31, %v611_v53 }
 0xdcb   :  { %v1714_v38 = vpop.eup %1713 }
 0xdcc   :  { %v746_v36 = vmul.f32 %v1712_v33, %v735_v34  ;;  %v742_v39 = vmul.f32 0.5, %v1714_v38 }
 0xdce   :  { %v747_v37 = vadd.f32 %v746_v36, %v745_v35  ;;  %v743_v40 = vadd.f32 0.5, %v742_v39  ;;  %v901_v39 = vld [vmem:[#allocation4 + $0xc0] sm:$0xff] }
 0xdd0   :  { %1715 = vtanh.f32 %v747_v37 }
 0xddd   :  { %v1716_v41 = vpop.eup %1715 }
 0xdde   :  { %v749_v42 = vmul.f32 %v1716_v41, %v743_v40 }
 0xde0   :  { %750 = vrot.lane.b32.xlu0 %v749_v42, %s1777_s7 }
 0xe52   :  { %v751_v43 = vpop.permute.xlu0 %750 }
 0xe53   :  { %v752_v44 = vsel %vm51_vm0, %v751_v43, %v749_v42 }
 0xe54   :  { %753 = vrot.lane.b32.xlu1 %v752_v44, %s1777_s7 }
 0xe58   :  { %759 = vrot.lane.b32.xlu1 %v749_v42, %s1779_s18 }
 0xec6   :  { %v754_v45 = vpop.permute.xlu1 %753 }
 0xec7   :  { %v755_v46 = vsel %vm51_vm0, %v754_v45, %v749_v42  ;;  %v904_v42 = vld [vmem:[#allocation4 + $0xd8] sm:$0xff] }
 0xec8   :  { %v757_v47 = vmul.f32 %v755_v46, %v1853_v6  ;;  %v756_v50 = vmul.f32 %v755_v46, %v1867_v11 }
 0xeca   :  { %762 = vrot.lane.b32.xlu0 %v757_v47, %s1781_s3  ;;  %v760_v48 = vpop.permute.xlu1 %759 }
 0xecb   :  { %772 = vrot.lane.b32.xlu1 %v760_v48, %s1780_s19  ;;  %v903_v48 = vld [vmem:[#allocation4 + $0xd0] sm:$0xff] }
 0xf3c   :  { %v763_v49 = vpop.permute.xlu0 %762 }
 0xf3d   :  { %774 = vrot.lane.b32.xlu0 %v763_v49, %s1780_s19  ;;  %v773_v52 = vpop.permute.xlu1 %772 }
 0xf41   :  { %770 = vrot.lane.b32.xlu0 %v756_v50, %s1780_s19 }
 0xfaf   :  { %v775_v51 = vpop.permute.xlu0 %774 }
 0xfb0   :  { %1569 = vmatprep.subr.mxu1 %v775_v51 }
 0xfb1   :  { %1570 = vmatpush3.msra.mxu1 %v775_v51 }
 0xfb2   :  { %1571 = vmatprep.subr.mxu1 %v773_v52 }
 0xfb3   :  { %v771_v53 = vpop.permute.xlu0 %770  ;;  %1572 = vmatpush3.msra.mxu1 %v773_v52 }
 0xfb4   :  { %1573 = vmatprep.subr.mxu1 %v771_v53 }
 0xfb5   :  { %1574 = vmatpush3.msra.mxu1 %v771_v53 }
 0xfb6   :  { %1576 = vmatmul.mubr.msk.f32.vlgmr.msra.gmra.mxu1 %vm86_vm1, %v1875_v17 }
 0xfb7   :  { %1578 = vmatprep.mubr.msk.f32.mxu1 %vm86_vm1, %v1880_v18 }
 0xfba   :  { %1579 = vmatmul.mubr.msk.f32.gmra.mxu1 %vm86_vm1, %v1889_v19 }
 0xfbb   :  { %1599 = vmatprep.mubr.msk.f32.mxu1 %vm86_vm1, %v1861_v10 }
0x1076   :  { %v1577_v55 = vpop.f32.mrf.mxu1 }
0x1077   :  { %v865_v57 = vadd.f32 %v1577_v55, %v766_v54 }
0x1078   :  { %v845_v58 = vpop.f32.mrf.mxu1 }
0x1079   :  { %v872_v60 = vmul.f32 0.5, %v865_v57  ;;  %v864_v61 = vadd.f32 %v845_v58, %v765_v56 }
0x107a   :  { %v1580_v62 = vpop.f32.mrf.mxu1 }
0x107b   :  { %1717 = vtanh.f32 %v872_v60  ;;  %v868_v63 = vmul.f32 0.5, %v864_v61  ;;  %v867_v0 = vadd.f32 %v1580_v62, %v768_v59 }
0x107c   :  { %v855_v3 = vpop.f32.mrf.mxu1 }
0x107d   :  { %1719 = vtanh.f32 %v868_v63  ;;  %v866_v4 = vadd.f32 %v855_v3, %v767_v2 }
0x107e   :  { %1721 = vtanh.f32 %v867_v0 }
0x107f   :  { %v876_v5 = vmul.f32 0.5, %v866_v4 }
0x1081   :  { %1723 = vtanh.f32 %v876_v5 }
0x1088   :  { %v1718_v7 = vpop.eup %1717 }
0x1089   :  { %v874_v10 = vmul.f32 0.5, %v1718_v7 }
0x108a   :  { %v1720_v8 = vpop.eup %1719 }
0x108b   :  { %v875_v9 = vadd.f32 0.5, %v874_v10  ;;  %v870_v12 = vmul.f32 0.5, %v1720_v8  ;;  %v1722_v13 = vpop.eup %1721 }
0x108d   :  { %v871_v14 = vadd.f32 0.5, %v870_v12  ;;  %v881_v15 = vmul.f32 %v875_v9, %v747_v37  ;;  %v902_v37 = vld [vmem:[#allocation4 + $0xc8] sm:$0xff] }
0x108e   :  { %v1724_v21 = vpop.eup %1723 }
0x108f   :  { %v882_v16 = vmul.f32 %v1722_v13, %v871_v14  ;;  %v878_v22 = vmul.f32 0.5, %v1724_v21 }
0x1091   :  { %v883_v20 = vadd.f32 %v882_v16, %v881_v15  ;;  %v879_v23 = vadd.f32 0.5, %v878_v22  ;;  %v1037_v22 = vld [vmem:[#allocation4 + $0xe0] sm:$0xff] }
0x1093   :  { %1725 = vtanh.f32 %v883_v20 }
0x10a0   :  { %v1726_v24 = vpop.eup %1725 }
0x10a1   :  { %v885_v25 = vmul.f32 %v1726_v24, %v879_v23 }
0x10a3   :  { %886 = vrot.lane.b32.xlu1 %v885_v25, %s1777_s7 }
0x1115   :  { %v887_v26 = vpop.permute.xlu1 %886 }
0x1116   :  { %v888_v27 = vsel %vm51_vm0, %v887_v26, %v885_v25 }
0x1117   :  { %889 = vrot.lane.b32.xlu0 %v888_v27, %s1777_s7 }
0x111b   :  { %895 = vrot.lane.b32.xlu0 %v885_v25, %s1779_s18 }
0x1189   :  { %v890_v28 = vpop.permute.xlu0 %889 }
0x118a   :  { %v891_v29 = vsel %vm51_vm0, %v890_v28, %v885_v25  ;;  %v1039_v25 = vld [vmem:[#allocation4 + $0xf8] sm:$0xff] }
0x118b   :  { %v893_v30 = vmul.f32 %v891_v29, %v1853_v6  ;;  %v892_v33 = vmul.f32 %v891_v29, %v1867_v11 }
0x118d   :  { %898 = vrot.lane.b32.xlu1 %v893_v30, %s1781_s3  ;;  %v896_v31 = vpop.permute.xlu0 %895 }
0x118e   :  { %908 = vrot.lane.b32.xlu0 %v896_v31, %s1780_s19 }
0x11ff   :  { %v899_v32 = vpop.permute.xlu1 %898 }
0x1200   :  { %910 = vrot.lane.b32.xlu1 %v899_v32, %s1780_s19  ;;  %v909_v35 = vpop.permute.xlu0 %908  ;;  %v1206_v32 = vld [vmem:[%s2123_s4 + $0x50] sm:$0xff] }
0x1204   :  { %906 = vrot.lane.b32.xlu1 %v892_v33, %s1780_s19  ;;  %v1205_v33 = vld [vmem:[%s2123_s4 + $0x48] sm:$0xff] }
0x1272   :  { %v911_v34 = vpop.permute.xlu1 %910 }
0x1273   :  { %1581 = vmatprep.subr.mxu0 %v911_v34 }
0x1274   :  { %1582 = vmatpush3.msra.mxu0 %v911_v34 }
0x1275   :  { %1583 = vmatprep.subr.mxu0 %v909_v35 }
0x1276   :  { %v907_v36 = vpop.permute.xlu1 %906  ;;  %1584 = vmatpush3.msra.mxu0 %v909_v35 }
0x1277   :  { %1585 = vmatprep.subr.mxu0 %v907_v36 }
0x1278   :  { %1586 = vmatpush3.msra.mxu0 %v907_v36  ;;  %v1204_v36 = vld [vmem:[%s2123_s4 + $0x40] sm:$0xff] }
0x1279   :  { %1588 = vmatmul.mubr.msk.f32.vlgmr.msra.gmra.mxu0 %vm86_vm1, %v1875_v17  ;;  %1605 = vmatprep.subr.mxu0 %v1776_v1 }
0x127a   :  { %1590 = vmatprep.mubr.msk.f32.mxu0 %vm86_vm1, %v1880_v18 }
0x127d   :  { %1591 = vmatmul.mubr.msk.f32.gmra.mxu0 %vm86_vm1, %v1889_v19 }
0x127e   :  { %1637 = vmatprep.mubr.msk.f32.mxu0 %vm1784_vm3, %v1776_v1 }
0x1339   :  { %v1589_v38 = vpop.f32.mrf.mxu0 }
0x133a   :  { %v1001_v40 = vadd.f32 %v1589_v38, %v902_v37 }
0x133b   :  { %v981_v41 = vpop.f32.mrf.mxu0 }
0x133c   :  { %v1008_v43 = vmul.f32 0.5, %v1001_v40  ;;  %v1000_v44 = vadd.f32 %v981_v41, %v901_v39  ;;  %v1203_v40 = vld [vmem:[%s2123_s4 + $0x38] sm:$0xff] }
0x133d   :  { %v1592_v45 = vpop.f32.mrf.mxu0 }
0x133e   :  { %1727 = vtanh.f32 %v1008_v43  ;;  %v1004_v46 = vmul.f32 0.5, %v1000_v44  ;;  %v1003_v47 = vadd.f32 %v1592_v45, %v904_v42  ;;  %v1202_v43 = vld [vmem:[%s2123_s4 + $0x30] sm:$0xff] }
0x133f   :  { %v991_v49 = vpop.f32.mrf.mxu0 }
0x1340   :  { %1729 = vtanh.f32 %v1004_v46  ;;  %v1002_v50 = vadd.f32 %v991_v49, %v903_v48  ;;  %v1201_v46 = vld [vmem:[%s2123_s4 + $0x28] sm:$0xff]  ;;  %v1200_v48 = vld [vmem:[%s2123_s4 + $0x20] sm:$0xff]  ;;  %v1199_v49 = vld [vmem:[%s2123_s4 + $0x18] sm:$0xff] }
0x1341   :  { %1731 = vtanh.f32 %v1003_v47 }
0x1342   :  { %v1012_v51 = vmul.f32 0.5, %v1002_v50  ;;  %v1198_v50 = vld [vmem:[%s2123_s4 + $0x10] sm:$0xff] }
0x1344   :  { %1733 = vtanh.f32 %v1012_v51  ;;  %v1197_v51 = vld [vmem:[%s2123_s4 + $0x8] sm:$0xff] }
0x134b   :  { %v1728_v52 = vpop.eup %1727 }
0x134c   :  { %v1010_v53 = vmul.f32 0.5, %v1728_v52  ;;  %v1196_v52 = vld [vmem:[%s2123_s4] sm:$0xff] }
0x134d   :  { %v1730_v54 = vpop.eup %1729 }
0x134e   :  { %v1011_v55 = vadd.f32 0.5, %v1010_v53  ;;  %v1006_v56 = vmul.f32 0.5, %v1730_v54  ;;  %v1732_v57 = vpop.eup %1731 }
0x1350   :  { %v1007_v58 = vadd.f32 0.5, %v1006_v56  ;;  %v1017_v59 = vmul.f32 %v1011_v55, %v883_v20  ;;  %v1038_v20 = vld [vmem:[#allocation4 + $0xe8] sm:$0xff] }
0x1351   :  { %v1734_v62 = vpop.eup %1733 }
0x1352   :  { %v1018_v60 = vmul.f32 %v1732_v57, %v1007_v58  ;;  %v1014_v63 = vmul.f32 0.5, %v1734_v62  ;;  %v1302_v62 = vld [vmem:[%s2125_s6 + $0x10] sm:$0xff] }
0x1354   :  { %v2008_v61 = vadd.f32 %v1018_v60, %v1017_v59  ;;  %v1015_v0 = vadd.f32 0.5, %v1014_v63  ;;  %v1301_v63 = vld [vmem:[%s2125_s6 + $0x8] sm:$0xff] }
0x1356   :  { %1735 = vtanh.f32 %v2008_v61 }
0x1363   :  { %v1736_v2 = vpop.eup %1735 }
0x1364   :  { %v1021_v3 = vmul.f32 %v1736_v2, %v1015_v0  ;;  %v1300_v0 = vld [vmem:[%s2125_s6] sm:$0xff] }
0x1365   :  { %v1428_v2 = vld [vmem:[%s2124_s5] ss:$0 sm:$0xff] }
0x1366   :  { %1022 = vrot.lane.b32.xlu0 %v1021_v3, %s1777_s7 }
0x13d8   :  { %v1023_v4 = vpop.permute.xlu0 %1022 }
0x13d9   :  { %v1024_v5 = vsel %vm51_vm0, %v1023_v4, %v1021_v3 }
0x13da   :  { %1025 = vrot.lane.b32.xlu1 %v1024_v5, %s1777_s7 }
0x13de   :  { %1031 = vrot.lane.b32.xlu1 %v1021_v3, %s1779_s18 }
0x144c   :  { %v1026_v7 = vpop.permute.xlu1 %1025 }
0x144d   :  { %v1027_v10 = vsel %vm51_vm0, %v1026_v7, %v1021_v3 }
0x144e   :  { %v1029_v8 = vmul.f32 %v1027_v10, %v1853_v6  ;;  %v1028_v13 = vmul.f32 %v1027_v10, %v1867_v11  ;;  %v1211_v6 = vld [vmem:[%s2123_s4 + $0x78] sm:$0xff]  ;;  %v1210_v11 = vld [vmem:[%s2123_s4 + $0x70] sm:$0xff] }
0x144f   :  { %1606 = vmatpush3.msra.mxu0 %v1211_v6 }
0x1450   :  { %1034 = vrot.lane.b32.xlu0 %v1029_v8, %s1781_s3  ;;  %v1032_v9 = vpop.permute.xlu1 %1031  ;;  %1607 = vmatprep.subr.mxu0 %v1776_v1 }
0x1451   :  { %1043 = vrot.lane.b32.xlu1 %v1032_v9, %s1780_s19  ;;  %1608 = vmatpush3.msra.mxu0 %v1210_v11  ;;  %v1429_v11 = vld [vmem:[#allocation3] ss:$0 sm:$0xff] }
0x1452   :  { %1609 = vmatprep.subr.mxu0 %v1776_v1 }
0x14c2   :  { %v1035_v12 = vpop.permute.xlu0 %1034 }
0x14c3   :  { %1045 = vrot.lane.b32.xlu0 %v1035_v12, %s1780_s19  ;;  %v1044_v15 = vpop.permute.xlu1 %1043 }
0x14c7   :  { %1041 = vrot.lane.b32.xlu0 %v1028_v13, %s1780_s19 }
0x1535   :  { %v1046_v14 = vpop.permute.xlu0 %1045 }
0x1536   :  { %1593 = vmatprep.subr.mxu1 %v1046_v14 }
0x1537   :  { %1594 = vmatpush3.msra.mxu1 %v1046_v14 }
0x1538   :  { %1595 = vmatprep.subr.mxu1 %v1044_v15 }
0x1539   :  { %v1042_v16 = vpop.permute.xlu0 %1041  ;;  %1596 = vmatpush3.msra.mxu1 %v1044_v15 }
0x153a   :  { %1597 = vmatprep.subr.mxu1 %v1042_v16 }
0x153b   :  { %1598 = vmatpush3.msra.mxu1 %v1042_v16 }
0x153c   :  { %1600 = vmatmul.mubr.msk.f32.vlgmr.msra.gmra.mxu1 %vm86_vm1, %v1875_v17  ;;  %1640 = vmatprep.subr.mxu1 %v1776_v1  ;;  %v1209_v17 = vld [vmem:[%s2123_s4 + $0x68] sm:$0xff] }
0x153d   :  { %1602 = vmatprep.mubr.msk.f32.mxu1 %vm86_vm1, %v1880_v18  ;;  %v1208_v18 = vld [vmem:[%s2123_s4 + $0x60] sm:$0xff]  ;;  %1610 = vmatpush3.msra.mxu0 %v1209_v17 }
0x153e   :  { %1611 = vmatprep.subr.mxu0 %v1776_v1 }
0x153f   :  { %1612 = vmatpush3.msra.mxu0 %v1208_v18 }
0x1540   :  { %1603 = vmatmul.mubr.msk.f32.gmra.mxu1 %vm86_vm1, %v1889_v19  ;;  %v1207_v19 = vld [vmem:[%s2123_s4 + $0x58] sm:$0xff]  ;;  %1613 = vmatprep.subr.mxu0 %v1776_v1 }
0x1541   :  { %1614 = vmatpush3.msra.mxu0 %v1207_v19  ;;  %1648 = vmatprep.mubr.msk.f32.mxu1 %vm1784_vm3, %v1776_v1 }
0x1542   :  { %1615 = vmatprep.subr.mxu0 %v1776_v1 }
0x1543   :  { %1616 = vmatpush3.msra.mxu0 %v1206_v32 }
0x1544   :  { %1617 = vmatprep.subr.mxu0 %v1776_v1 }
0x1545   :  { %1618 = vmatpush3.msra.mxu0 %v1205_v33 }
0x1546   :  { %1619 = vmatprep.subr.mxu0 %v1776_v1 }
0x1547   :  { %1620 = vmatpush3.msra.mxu0 %v1204_v36 }
0x1548   :  { %1621 = vmatprep.subr.mxu0 %v1776_v1 }
0x1549   :  { %1622 = vmatpush3.msra.mxu0 %v1203_v40 }
0x154a   :  { %1623 = vmatprep.subr.mxu0 %v1776_v1 }
0x154b   :  { %1624 = vmatpush3.msra.mxu0 %v1202_v43 }
0x154c   :  { %1625 = vmatprep.subr.mxu0 %v1776_v1 }
0x154d   :  { %1626 = vmatpush3.msra.mxu0 %v1201_v46 }
0x154e   :  { %1627 = vmatprep.subr.mxu0 %v1776_v1 }
0x154f   :  { %1628 = vmatpush3.msra.mxu0 %v1200_v48 }
0x1550   :  { %1629 = vmatprep.subr.mxu0 %v1776_v1 }
0x1551   :  { %1630 = vmatpush3.msra.mxu0 %v1199_v49 }
0x1552   :  { %1631 = vmatprep.subr.mxu0 %v1776_v1 }
0x1553   :  { %1632 = vmatpush3.msra.mxu0 %v1198_v50 }
0x1554   :  { %1633 = vmatprep.subr.mxu0 %v1776_v1 }
0x1555   :  { %1634 = vmatpush3.msra.mxu0 %v1197_v51 }
0x1556   :  { %1635 = vmatprep.subr.mxu0 %v1776_v1 }
0x1557   :  { %1636 = vmatpush3.msra.mxu0 %v1196_v52 }
0x15fc   :  { %v1601_v21 = vpop.f32.mrf.mxu1 }
0x15fd   :  { %v1135_v23 = vadd.f32 %v1601_v21, %v1038_v20 }
0x15fe   :  { %v1116_v24 = vpop.f32.mrf.mxu1 }
0x15ff   :  { %v1141_v26 = vmul.f32 0.5, %v1135_v23  ;;  %v1134_v27 = vadd.f32 %v1116_v24, %v1037_v22 }
0x1600   :  { %v1604_v28 = vpop.f32.mrf.mxu1 }
0x1601   :  { %1737 = vtanh.f32 %v1141_v26  ;;  %v1137_v29 = vmul.f32 0.5, %v1134_v27  ;;  %v1136_v30 = vadd.f32 %v1604_v28, %v1039_v25 }
0x1602   :  { %v1126_v31 = vpop.f32.mrf.mxu1 }
0x1603   :  { %1739 = vtanh.f32 %v1137_v29 }
0x1604   :  { %1741 = vtanh.f32 %v1136_v30 }
0x160e   :  { %v1738_v34 = vpop.eup %1737 }
0x160f   :  { %v1143_v35 = vmul.f32 0.5, %v1738_v34 }
0x1610   :  { %v1740_v37 = vpop.eup %1739 }
0x1611   :  { %v1144_v38 = vadd.f32 0.5, %v1143_v35  ;;  %v1139_v39 = vmul.f32 0.5, %v1740_v37  ;;  %v1742_v41 = vpop.eup %1741 }
0x1613   :  { %v1140_v42 = vadd.f32 0.5, %v1139_v39  ;;  %v1146_v44 = vmul.f32 %v1144_v38, %v2008_v61  ;;  %v1303_v61 = vld [vmem:[%s2125_s6 + $0x18] sm:$0xff] }
0x1614   :  { %1641 = vmatpush3.msra.mxu1 %v1303_v61 }
0x1615   :  { %v1147_v45 = vmul.f32 %v1742_v41, %v1140_v42  ;;  %1642 = vmatprep.subr.mxu1 %v1776_v1 }
0x1616   :  { %1643 = vmatpush3.msra.mxu1 %v1302_v62 }
0x1617   :  { %v1148_v47 = vadd.f32 %v1147_v45, %v1146_v44  ;;  %1644 = vmatprep.subr.mxu1 %v1776_v1 }
0x1618   :  { %1645 = vmatpush3.msra.mxu1 %v1301_v63 }
0x1619   :  { %1152 = vrot.lane.b32.xlu0 %v1148_v47, %s1782_s25  ;;  %1182 = vrot.lane.b32.xlu1 %v1148_v47, %s1783_s26  ;;  %1150 = vst.msk [vmem:[#allocation2] sm:$0x1] %vm1149_vm2, %v1148_v47 }
0x161a   :  { %1646 = vmatprep.subr.mxu1 %v1776_v1 }
0x161b   :  { %1647 = vmatpush3.msra.mxu1 %v1300_v0 }
0x161d   :  { %1162 = vrot.lane.b32.xlu0 %v1148_v47, %s1785_s30  ;;  %1157 = vrot.lane.b32.xlu1 %v1148_v47, %s1777_s7  ;;  %s1788_s7 = smov 96  }
0x1621   :  { %1172 = vrot.lane.b32.xlu0 %v1148_v47, %s1786_s13  ;;  %1167 = vrot.lane.b32.xlu1 %v1148_v47, %s1787_s14 }
0x1625   :  { %1177 = vrot.lane.b32.xlu1 %v1148_v47, %s1788_s7 }
0x168b   :  { %v1153_v53 = vpop.permute.xlu0 %1152  ;;  %v1183_v54 = vpop.permute.xlu1 %1182 }
0x168c   :  { %1156 = vst.msk [vmem:[#allocation2 - $0x1] sm:$0x2] %vm1155_vm4, %v1153_v53 }
0x168d   :  { %1187 = vst.msk [vmem:[#allocation2 + $0x1] sm:$0x1] %vm1149_vm2, %v1183_v54 }
0x168e   :  { %1188 = vst.msk [vmem:[#allocation2] sm:$0x2] %vm1155_vm4, %v1148_v47 }
0x168f   :  { %1189 = vst.msk [vmem:[#allocation2 - $0x1] sm:$0x4] %vm1160_vm5, %v1153_v53  ;;  %v1163_v55 = vpop.permute.xlu0 %1162  ;;  %v1158_v56 = vpop.permute.xlu1 %1157 }
0x1690   :  { %1161 = vst.msk [vmem:[#allocation2 - $0x2] sm:$0x4] %vm1160_vm5, %v1158_v56 }
0x1691   :  { %1190 = vst.msk [vmem:[#allocation2 - $0x2] sm:$0x8] %vm1165_vm6, %v1158_v56  ;;  %1166 = vst.msk [vmem:[#allocation2 - $0x3] sm:$0x8] %vm1165_vm6, %v1163_v55 }
0x1692   :  { %1191 = vst.msk [vmem:[#allocation2 - $0x3] sm:$0x10] %vm1170_vm7, %v1163_v55 }
0x1693   :  { %v1173_v57 = vpop.permute.xlu0 %1172  ;;  %v1168_v58 = vpop.permute.xlu1 %1167 }
0x1694   :  { %1171 = vst.msk [vmem:[#allocation2 - $0x4] sm:$0x10] %vm1170_vm7, %v1168_v58 }
0x1695   :  { %1192 = vst.msk [vmem:[#allocation2 - $0x4] sm:$0x20] %vm1175_vm8, %v1168_v58  ;;  %1176 = vst.msk [vmem:[#allocation2 - $0x5] sm:$0x20] %vm1175_vm8, %v1173_v57 }
0x1696   :  { %1193 = vst.msk [vmem:[#allocation2 - $0x5] sm:$0x40] %vm1180_vm9, %v1173_v57 }
0x1697   :  { %v1178_v59 = vpop.permute.xlu1 %1177 }
0x1698   :  { %1181 = vst.msk [vmem:[#allocation2 - $0x6] sm:$0x40] %vm1180_vm9, %v1178_v59 }
0x1699   :  { %1194 = vst.msk [vmem:[#allocation2 - $0x6] sm:$0x80] %vm1185_vm10, %v1178_v59  ;;  %1186 = vst.msk [vmem:[#allocation2 - $0x7] sm:$0x80] %vm1185_vm10, %v1183_v54 }
0x16a0   :  { %v1195_v60 = vld [vmem:[#allocation2] sm:$0x3] }
0x16a1   :  { %1638 = vmatmul.mubr.f32.vlgmr.msra.gmra.mxu0 %v1195_v60 }
0x1761   :  { %v1285_v3 = vpop.f32.mrf.mxu0 }
0x1762   :  { %v1286_v4 = vadd.f32 %v1428_v2, %v1285_v3 }
0x1763   :  { %v1639_v5 = vpop.f32.mrf.mxu0 }
0x1764   :  { %v1290_v7 = vand.u32 2147483647, %v1286_v4  ;;  %v1289_v13 = vmax.f32 %v1286_v4, 0.0 }
0x1766   :  { %v1291_v10 = vsub.f32 0.0, %v1290_v7 }
0x1768   :  { %v1292_v8 = vmul.f32 1.442695, %v1291_v10 }
0x176a   :  { %1743 = vpow2.f32 %v1292_v8 }
0x1777   :  { %v1744_v9 = vpop.eup %1743 }
0x1778   :  { %v1294_v12 = vadd.f32 1.0, %v1744_v9 }
0x177a   :  { %1745 = vlog2.f32 %v1294_v12 }
0x1787   :  { %v1746_v1 = vpop.eup %1745 }
0x1788   :  { %v1296_v14 = vmul.f32 0.6931472, %v1746_v1 }
0x178a   :  { %v1297_v15 = vadd.f32 %v1296_v14, %v1289_v13 }
0x178c   :  { %1747 = vtanh.f32 %v1297_v15 }
0x1799   :  { %v1748_v16 = vpop.eup %1747 }
0x179a   :  { %v1299_v6 = vmul.f32 %v1748_v16, %v1286_v4 }
0x179c   :  { %1649 = vmatmul.mubr.msk.f32.vlgmr.msra.gmra.mxu1 %vm1311_vm11, %v1299_v6 }
0x185c   :  { %v1381_v17 = vpop.f32.mrf.mxu1 }
0x185d   :  { %v1382_v18 = vadd.f32 %v1429_v11, %v1381_v17 }
0x185e   :  { %v1650_v19 = vpop.f32.mrf.mxu1 }
0x185f   :  { %v1385_v20 = vmul.f32 0.5, %v1382_v18 }
0x1861   :  { %1749 = vtanh.f32 %v1385_v20 }
0x186e   :  { %v1750_v21 = vpop.eup %1749 }
0x186f   :  { %v1387_v22 = vmul.f32 0.5, %v1750_v21 }
0x1871   :  { %v1388_v23 = vadd.f32 0.5, %v1387_v22 }
0x1873   :  { %1390 = vst.msk [vmem:[%s2127_s8] sm:$0x3] %vm1389_vm12, %v1388_v23 }
0x1874   :  { %1395 = vsyncpa [#allocation5], 1 }

</bundles_post_ra>
